<compile_context>
chip_gen: v7x
topology: tpu7x:2x2x1
jax: 0.10.0
libtpu: 0.0.40
codegen_flags: <defaults>
</compile_context>

<pallas_src>
import inspect

import jax
import jax.numpy as jnp
from jax.experimental import pallas as pl
from jax.experimental.pallas import tpu as pltpu

NEG_SLOPE = 0.01   # torch.nn.functional.leaky_relu default
LN_EPS = 1e-5      # torch.nn.LayerNorm default


def _supports_pipeline_mode():
    """Explicit feature check for BlockSpec(pipeline_mode=...) / pl.Buffered."""
    if not hasattr(pl, "Buffered"):
        return False
    try:
        return "pipeline_mode" in inspect.signature(pl.BlockSpec).parameters
    except (TypeError, ValueError):
        return False


_HAS_PIPELINE_MODE = _supports_pipeline_mode()


def _leaky_relu(v):
    return jnp.where(v >= 0, v, NEG_SLOPE * v)


def _layernorm(v, gamma, beta):
    # var = E[v^2] - mu^2: one fewer VPU pass over the (tb, H) tile than
    # E[(v-mu)^2], and the two cross-lane reductions are independent so they can
    # overlap on the XLUs. eps inside rsqrt, biased variance, affine — matches
    # torch.nn.LayerNorm.
    mu = jnp.mean(v, axis=-1, keepdims=True)
    var = jnp.mean(v * v, axis=-1, keepdims=True) - mu * mu
    return (v - mu) * jax.lax.rsqrt(var + LN_EPS) * gamma + beta


def _pick_batch_tile(batch):
    """Batch-tiling policy (perf review):
       - B <= 1024 (or B not a multiple of 8): one full tile, grid=(1,).
         A (1024,128) f32 activation tile is ~0.5 MiB, so VMEM is a non-issue on
         v5e/v6e/v7x, and a single tile avoids the ~0.35us/step pipeline overhead
         that dominates on the single-TC chips.
       - larger B: largest multiple-of-8 divisor in [256, 1024], so the "parallel"
         axis has >=2 steps of >=256 rows each (v7x's two TensorCores split the
         batch while each tile still saturates the MXU M dimension)."""
    if batch % 8 != 0 or batch <= 1024:
        return batch
    for tb in range(1024, 255, -8):
        if batch % tb == 0:
            return tb
    return batch


def residual_net_kernel(x_ref, wi_ref, bi_ref,
                        w1_ref, b1_ref, g1_ref, be1_ref,
                        w2_ref, b2_ref, g2_ref, be2_ref,
                        wo_ref, bo_ref, o_ref):
    """One batch tile: 2 + 2*hid_layers MXU matmuls + leaky_relu + layernorms."""

    def mm(a, w):
        # Cast activations to the (possibly bf16) weight dtype; accumulate in f32.
        return jnp.dot(a.astype(w.dtype), w, preferred_element_type=jnp.float32)

    h = _leaky_relu(mm(x_ref[...], wi_ref[...]) + bi_ref[...])

    # Static unroll: hid_layers is small and fixed.
    # TODO(synk): if hid_layers/hid_dim grow, move the layer index onto a trailing
    # 'arbitrary' grid axis and stream one (H,H) weight pair per step instead of
    # keeping all stacks resident (v7x VMEM is 64 MiB physical / 32 MiB scoped).
    n_blocks = w1_ref.shape[0]
    for l in range(n_blocks):
        z = _leaky_relu(mm(h, w1_ref[l]) + b1_ref[l])
        z = _layernorm(z, g1_ref[l], be1_ref[l])
        z = _leaky_relu(mm(z, w2_ref[l]) + b2_ref[l])
        z = _layernorm(z, g2_ref[l], be2_ref[l])
        h = h + z

    o_ref[...] = (mm(h, wo_ref[...]) + bo_ref[...]).astype(o_ref.dtype)


def _param_spec(shape):
    nd = len(shape)
    index_map = lambda i, _n=nd: (0,) * _n
    if _HAS_PIPELINE_MODE:
        # Grid-invariant block: one resident copy is enough -> halves parameter
        # VMEM footprint and keeps weight DMA to a single prologue copy.
        return pl.BlockSpec(shape, index_map, pipeline_mode=pl.Buffered(1))
    return pl.BlockSpec(shape, index_map)


def _run_pallas(args, *, B, L, H, O, nb, tb, out_dtype):
    grid = (B // tb,)
    in_specs = [
        pl.BlockSpec((tb, L), lambda i: (i, 0)),   # x tile, unpadded (MXU takes K=L)
        _param_spec((L, H)),        # Wi
        _param_spec((1, H)),        # bi
        _param_spec((nb, H, H)),    # W1 stack
        _param_spec((nb, 1, H)),    # b1
        _param_spec((nb, 1, H)),    # g1
        _param_spec((nb, 1, H)),    # be1
        _param_spec((nb, H, H)),    # W2 stack
        _param_spec((nb, 1, H)),    # b2
        _param_spec((nb, 1, H)),    # g2
        _param_spec((nb, 1, H)),    # be2
        _param_spec((H, O)),        # Wo
        _param_spec((1, O)),        # bo
    ]
    # Unpadded (tb, O) output: masked stores when O < 128, but avoids the 8x padded
    # f32 HBM writeback plus the extra wrapper-side slice pass over the result.
    out_specs = pl.BlockSpec((tb, O), lambda i: (i, 0))

    flops = 2 * B * (L * H + 2 * nb * H * H + H * O)
    transcendentals = 2 * nb * B   # one rsqrt per row per LayerNorm
    bytes_accessed = int(sum(int(a.size) * a.dtype.itemsize for a in args)
                         + B * O * jnp.dtype(out_dtype).itemsize)

    return pl.pallas_call(
        residual_net_kernel,
        out_shape=jax.ShapeDtypeStruct((B, O), out_dtype),
        grid=grid,
        in_specs=in_specs,
        out_specs=out_specs,
        compiler_params=pltpu.CompilerParams(
            dimension_semantics=("parallel",),
            vmem_limit_bytes=64 * 1024 * 1024),
        cost_estimate=pl.CostEstimate(flops=flops,
                                      transcendentals=transcendentals,
                                      bytes_accessed=bytes_accessed),
    )(*args)


def residual_net_forward(x, params, *, batch_tile=None,
                         matmul_dtype=jnp.bfloat16, out_dtype=jnp.float32):
    """ResidualNet forward pass via a single fused Pallas TPU kernel.

    matmul_dtype: dtype fed to the MXU (weights + activations). bfloat16 is the
    fast path on all generations; jnp.float32 matches the f32 reference tightly.
    """
    is_batched = x.ndim > 1
    if not is_batched:
        x = x[None, :]
    x = x.astype(jnp.float32)

    B, L = x.shape
    H = params["wi"].shape[1]
    O = params["wo"].shape[1]
    nb = params["w1"].shape[0]

    tb = batch_tile if batch_tile is not None else _pick_batch_tile(B)
    assert B % tb == 0, f"batch {B} must be divisible by batch_tile {tb}"
    assert tb % 8 == 0 or tb == B, (
        "batch_tile must be a multiple of 8 (f32 sublane) or equal the full batch")

    # Matmul operands in matmul_dtype (bf16 default: halves weight DMA + VMEM,
    # f32 accumulation on the MXU); bias / leaky_relu / layernorm stay in f32.
    f32 = lambda a: a.astype(jnp.float32)
    args = (x,
            params["wi"].astype(matmul_dtype), f32(params["bi"]),
            params["w1"].astype(matmul_dtype), f32(params["b1"]),
            f32(params["g1"]), f32(params["be1"]),
            params["w2"].astype(matmul_dtype), f32(params["b2"]),
            f32(params["g2"]), f32(params["be2"]),
            params["wo"].astype(matmul_dtype), f32(params["bo"]))

    y = _run_pallas(args, B=B, L=L, H=H, O=O, nb=nb, tb=tb, out_dtype=out_dtype)

    if not is_batched:
        y = y[0]
    return y


def make_params(key, latent_dim, output_dim, hid_layers=3, hid_dim=128,
                dtype=jnp.float32):
    """Deterministic synthetic parameters matching ResidualNet.__init__ shapes."""
    ks = jax.random.split(key, 8)

    def kaiming(k, fan_in, shape):
        return (jax.random.normal(k, shape, dtype) *
                jnp.sqrt(2.0 / fan_in)).astype(dtype)

    params = {
        # input_proj: Linear(latent_dim, hid_dim)
        "wi": kaiming(ks[0], latent_dim, (latent_dim, hid_dim)),
        "bi": 0.01 * jax.random.normal(ks[1], (1, hid_dim), dtype),
        # residual blocks: Linear / LayerNorm / Linear / LayerNorm, stacked on axis 0
        "w1": kaiming(ks[2], hid_dim, (hid_layers, hid_dim, hid_dim)),
        "b1": 0.01 * jax.random.normal(ks[3], (hid_layers, 1, hid_dim), dtype),
        "g1": jnp.ones((hid_layers, 1, hid_dim), dtype),
        "be1": jnp.zeros((hid_layers, 1, hid_dim), dtype),
        "w2": 0.1 * kaiming(ks[4], hid_dim, (hid_layers, hid_dim, hid_dim)),
        "b2": 0.01 * jax.random.normal(ks[5], (hid_layers, 1, hid_dim), dtype),
        "g2": jnp.ones((hid_layers, 1, hid_dim), dtype),
        "be2": jnp.zeros((hid_layers, 1, hid_dim), dtype),
        # output_proj: Linear(hid_dim, output_dim). __init__ zeroes the weight; use a
        # small nonzero weight so the matmul is actually exercised.
        "wo": 0.01 * jax.random.normal(ks[6], (hid_dim, output_dim), dtype),
        "bo": 0.01 * jax.random.normal(ks[7], (1, output_dim), dtype),
    }
    return params


def residual_net_reference(x, params):
    """Pure-JAX f32 reference (mirrors the PyTorch forward) for validation."""
    is_batched = x.ndim > 1
    if not is_batched:
        x = x[None, :]

    def ln(v, gamma, beta):
        mu = jnp.mean(v, axis=-1, keepdims=True)
        var = jnp.mean(jnp.square(v - mu), axis=-1, keepdims=True)
        return (v - mu) * jax.lax.rsqrt(var + LN_EPS) * gamma + beta

    h = _leaky_relu(x @ params["wi"] + params["bi"])
    nb = params["w1"].shape[0]
    for l in range(nb):
        z = _leaky_relu(h @ params["w1"][l] + params["b1"][l])
        z = ln(z, params["g1"][l], params["be1"][l])
        z = _leaky_relu(z @ params["w2"][l] + params["b2"][l])
        z = ln(z, params["g2"][l], params["be2"][l])
        h = h + z
    y = h @ params["wo"] + params["bo"]
    if not is_batched:
        y = y[0]
    return y


if __name__ == "__main__":
    # Small shapes consistent with the module; B=16 -> a single 16-row tile, grid=(1,).
    B, LATENT, HID, OUT, LAYERS = 16, 32, 128, 16, 3

    key = jax.random.PRNGKey(0)
    kx, kp = jax.random.split(key)
    x = jax.random.normal(kx, (B, LATENT), jnp.float32)
    params = make_params(kp, LATENT, OUT, hid_layers=LAYERS, hid_dim=HID)

    y_ref = residual_net_reference(x, params)

    # Exact-f32 MXU path: tight check of the kernel semantics.
    y_f32 = residual_net_forward(x, params, matmul_dtype=jnp.float32)
    jax.block_until_ready(y_f32)
    assert y_f32.shape == (B, OUT)
    assert jnp.allclose(y_f32, y_ref, atol=1e-4, rtol=1e-4), "f32 kernel mismatch"

    # Default fast path: bf16 MXU inputs, f32 accumulation -> looser tolerance.
    y_bf16 = residual_net_forward(x, params)
    jax.block_until_ready(y_bf16)
    assert y_bf16.shape == (B, OUT)
    assert jnp.allclose(y_bf16, y_ref, atol=3e-2, rtol=3e-2), "bf16 kernel mismatch"

    # Unbatched path (1-D input), as the PyTorch module supports.
    xv = x[0]
    y_vec = residual_net_forward(xv, params, matmul_dtype=jnp.float32)
    jax.block_until_ready(y_vec)
    assert y_vec.shape == (OUT,)
    assert jnp.allclose(y_vec, residual_net_reference(xv, params),
                        atol=1e-4, rtol=1e-4), "unbatched kernel mismatch"

    print("KERNEL_OK")
</pallas_src>

<mosaic_0001>
module attributes {stable_mosaic.version = 11 : i64} {
  func.func @residual_net_kernel(%arg0: i32, %arg1: memref<16x32xf32, #tpu.memory_space<vmem>>, %arg2: memref<32x128xf32, #tpu.memory_space<vmem>>, %arg3: memref<1x128xf32, #tpu.memory_space<vmem>>, %arg4: memref<3x128x128xf32, #tpu.memory_space<vmem>>, %arg5: memref<3x1x128xf32, #tpu.memory_space<vmem>>, %arg6: memref<3x1x128xf32, #tpu.memory_space<vmem>>, %arg7: memref<3x1x128xf32, #tpu.memory_space<vmem>>, %arg8: memref<3x128x128xf32, #tpu.memory_space<vmem>>, %arg9: memref<3x1x128xf32, #tpu.memory_space<vmem>>, %arg10: memref<3x1x128xf32, #tpu.memory_space<vmem>>, %arg11: memref<3x1x128xf32, #tpu.memory_space<vmem>>, %arg12: memref<128x16xf32, #tpu.memory_space<vmem>>, %arg13: memref<1x16xf32, #tpu.memory_space<vmem>>, %arg14: memref<16x16xf32, #tpu.memory_space<vmem>>) attributes {dimension_semantics = [#tpu.dimension_semantics<parallel>], iteration_bounds = array<i64: 1>, scalar_prefetch = 0 : i64, scratch_operands = 0 : i64, tpu.core_type = #tpu.core_type<tc>, window_params = [{transform_indices = @transform_0, window_bounds = array<i64: 16, 32>}, {pipeline_mode = #tpu.pipeline_mode<synchronous>, transform_indices = @transform_1, window_bounds = array<i64: 32, 128>}, {pipeline_mode = #tpu.pipeline_mode<synchronous>, transform_indices = @transform_2, window_bounds = array<i64: 1, 128>}, {pipeline_mode = #tpu.pipeline_mode<synchronous>, transform_indices = @transform_3, window_bounds = array<i64: 3, 128, 128>}, {pipeline_mode = #tpu.pipeline_mode<synchronous>, transform_indices = @transform_4, window_bounds = array<i64: 3, 1, 128>}, {pipeline_mode = #tpu.pipeline_mode<synchronous>, transform_indices = @transform_5, window_bounds = array<i64: 3, 1, 128>}, {pipeline_mode = #tpu.pipeline_mode<synchronous>, transform_indices = @transform_6, window_bounds = array<i64: 3, 1, 128>}, {pipeline_mode = #tpu.pipeline_mode<synchronous>, transform_indices = @transform_7, window_bounds = array<i64: 3, 128, 128>}, {pipeline_mode = #tpu.pipeline_mode<synchronous>, transform_indices = @transform_8, window_bounds = array<i64: 3, 1, 128>}, {pipeline_mode = #tpu.pipeline_mode<synchronous>, transform_indices = @transform_9, window_bounds = array<i64: 3, 1, 128>}, {pipeline_mode = #tpu.pipeline_mode<synchronous>, transform_indices = @transform_10, window_bounds = array<i64: 3, 1, 128>}, {pipeline_mode = #tpu.pipeline_mode<synchronous>, transform_indices = @transform_11, window_bounds = array<i64: 128, 16>}, {pipeline_mode = #tpu.pipeline_mode<synchronous>, transform_indices = @transform_12, window_bounds = array<i64: 1, 16>}, {transform_indices = @transform_13, window_bounds = array<i64: 16, 16>}]} {
    %c0 = arith.constant 0 : index
    %c0_0 = arith.constant 0 : index
    %0 = vector.load %arg1[%c0, %c0_0] : memref<16x32xf32, #tpu.memory_space<vmem>>, vector<16x32xf32>
    %c0_1 = arith.constant 0 : index
    %c0_2 = arith.constant 0 : index
    %1 = vector.load %arg2[%c0_1, %c0_2] : memref<32x128xf32, #tpu.memory_space<vmem>>, vector<32x128xf32>
    %cst = arith.constant dense<0.000000e+00> : vector<16x128xf32>
    %2 = tpu.matmul %0, %1, %cst {dimension_numbers = #tpu.dot_dimension_numbers<[1], [0], [0], [1], [0, 0, 1, 1], [], []>} : vector<16x32xf32>, vector<32x128xf32>, vector<16x128xf32> -> vector<16x128xf32>
    %c0_3 = arith.constant 0 : index
    %c0_4 = arith.constant 0 : index
    %3 = vector.load %arg3[%c0_3, %c0_4] : memref<1x128xf32, #tpu.memory_space<vmem>>, vector<1x128xf32>
    %4 = vector.broadcast %3 : vector<1x128xf32> to vector<16x128xf32>
    %5 = arith.addf %2, %4 : vector<16x128xf32>
    %cst_5 = arith.constant 0.000000e+00 : f32
    %6 = vector.broadcast %cst_5 : f32 to vector<16x128xf32>
    %7 = arith.cmpf oge, %5, %6 : vector<16x128xf32>
    %cst_6 = arith.constant 0.00999999977 : f32
    %8 = vector.broadcast %cst_6 : f32 to vector<16x128xf32>
    %9 = arith.mulf %8, %5 : vector<16x128xf32>
    %10 = arith.select %7, %5, %9 : vector<16x128xi1>, vector<16x128xf32>
    %c0_7 = arith.constant 0 : index
    %c0_8 = arith.constant 0 : index
    %c0_9 = arith.constant 0 : index
    %11 = vector.load %arg4[%c0_7, %c0_8, %c0_9] : memref<3x128x128xf32, #tpu.memory_space<vmem>>, vector<1x128x128xf32>
    %12 = vector.shape_cast %11 : vector<1x128x128xf32> to vector<128x128xf32>
    %cst_10 = arith.constant dense<0.000000e+00> : vector<16x128xf32>
    %13 = tpu.matmul %10, %12, %cst_10 {dimension_numbers = #tpu.dot_dimension_numbers<[1], [0], [0], [1], [0, 0, 1, 1], [], []>} : vector<16x128xf32>, vector<128x128xf32>, vector<16x128xf32> -> vector<16x128xf32>
    %c0_11 = arith.constant 0 : index
    %c0_12 = arith.constant 0 : index
    %c0_13 = arith.constant 0 : index
    %14 = vector.load %arg5[%c0_11, %c0_12, %c0_13] : memref<3x1x128xf32, #tpu.memory_space<vmem>>, vector<1x1x128xf32>
    %15 = vector.shape_cast %14 : vector<1x1x128xf32> to vector<1x128xf32>
    %16 = vector.broadcast %15 : vector<1x128xf32> to vector<16x128xf32>
    %17 = arith.addf %13, %16 : vector<16x128xf32>
    %cst_14 = arith.constant 0.000000e+00 : f32
    %18 = vector.broadcast %cst_14 : f32 to vector<16x128xf32>
    %19 = arith.cmpf oge, %17, %18 : vector<16x128xf32>
    %cst_15 = arith.constant 0.00999999977 : f32
    %20 = vector.broadcast %cst_15 : f32 to vector<16x128xf32>
    %21 = arith.mulf %20, %17 : vector<16x128xf32>
    %22 = arith.select %19, %17, %21 : vector<16x128xi1>, vector<16x128xf32>
    %c0_16 = arith.constant 0 : index
    %c0_17 = arith.constant 0 : index
    %c0_18 = arith.constant 0 : index
    %23 = vector.load %arg6[%c0_16, %c0_17, %c0_18] : memref<3x1x128xf32, #tpu.memory_space<vmem>>, vector<1x1x128xf32>
    %24 = vector.shape_cast %23 : vector<1x1x128xf32> to vector<1x128xf32>
    %c0_19 = arith.constant 0 : index
    %c0_20 = arith.constant 0 : index
    %c0_21 = arith.constant 0 : index
    %25 = vector.load %arg7[%c0_19, %c0_20, %c0_21] : memref<3x1x128xf32, #tpu.memory_space<vmem>>, vector<1x1x128xf32>
    %26 = vector.shape_cast %25 : vector<1x1x128xf32> to vector<1x128xf32>
    %cst_22 = arith.constant dense<0.000000e+00> : vector<16xf32>
    %27 = vector.multi_reduction <add>, %22, %cst_22 [1] : vector<16x128xf32> to vector<16xf32>
    %28 = vector.shape_cast %27 : vector<16xf32> to vector<16x1xf32>
    %cst_23 = arith.constant 1.280000e+02 : f32
    %29 = vector.broadcast %cst_23 : f32 to vector<16x1xf32>
    %30 = arith.divf %28, %29 : vector<16x1xf32>
    %31 = arith.mulf %22, %22 : vector<16x128xf32>
    %cst_24 = arith.constant dense<0.000000e+00> : vector<16xf32>
    %32 = vector.multi_reduction <add>, %31, %cst_24 [1] : vector<16x128xf32> to vector<16xf32>
    %33 = vector.shape_cast %32 : vector<16xf32> to vector<16x1xf32>
    %cst_25 = arith.constant 1.280000e+02 : f32
    %34 = vector.broadcast %cst_25 : f32 to vector<16x1xf32>
    %35 = arith.divf %33, %34 : vector<16x1xf32>
    %36 = arith.mulf %30, %30 : vector<16x1xf32>
    %37 = arith.subf %35, %36 : vector<16x1xf32>
    %38 = vector.broadcast %30 : vector<16x1xf32> to vector<16x128xf32>
    %39 = arith.subf %22, %38 : vector<16x128xf32>
    %cst_26 = arith.constant 9.99999974E-6 : f32
    %40 = vector.broadcast %cst_26 : f32 to vector<16x1xf32>
    %41 = arith.addf %37, %40 : vector<16x1xf32>
    %42 = math.rsqrt %41 : vector<16x1xf32>
    %43 = vector.broadcast %42 : vector<16x1xf32> to vector<16x128xf32>
    %44 = arith.mulf %39, %43 : vector<16x128xf32>
    %45 = vector.broadcast %24 : vector<1x128xf32> to vector<16x128xf32>
    %46 = arith.mulf %44, %45 : vector<16x128xf32>
    %47 = vector.broadcast %26 : vector<1x128xf32> to vector<16x128xf32>
    %48 = arith.addf %46, %47 : vector<16x128xf32>
    %c0_27 = arith.constant 0 : index
    %c0_28 = arith.constant 0 : index
    %c0_29 = arith.constant 0 : index
    %49 = vector.load %arg8[%c0_27, %c0_28, %c0_29] : memref<3x128x128xf32, #tpu.memory_space<vmem>>, vector<1x128x128xf32>
    %50 = vector.shape_cast %49 : vector<1x128x128xf32> to vector<128x128xf32>
    %cst_30 = arith.constant dense<0.000000e+00> : vector<16x128xf32>
    %51 = tpu.matmul %48, %50, %cst_30 {dimension_numbers = #tpu.dot_dimension_numbers<[1], [0], [0], [1], [0, 0, 1, 1], [], []>} : vector<16x128xf32>, vector<128x128xf32>, vector<16x128xf32> -> vector<16x128xf32>
    %c0_31 = arith.constant 0 : index
    %c0_32 = arith.constant 0 : index
    %c0_33 = arith.constant 0 : index
    %52 = vector.load %arg9[%c0_31, %c0_32, %c0_33] : memref<3x1x128xf32, #tpu.memory_space<vmem>>, vector<1x1x128xf32>
    %53 = vector.shape_cast %52 : vector<1x1x128xf32> to vector<1x128xf32>
    %54 = vector.broadcast %53 : vector<1x128xf32> to vector<16x128xf32>
    %55 = arith.addf %51, %54 : vector<16x128xf32>
    %cst_34 = arith.constant 0.000000e+00 : f32
    %56 = vector.broadcast %cst_34 : f32 to vector<16x128xf32>
    %57 = arith.cmpf oge, %55, %56 : vector<16x128xf32>
    %cst_35 = arith.constant 0.00999999977 : f32
    %58 = vector.broadcast %cst_35 : f32 to vector<16x128xf32>
    %59 = arith.mulf %58, %55 : vector<16x128xf32>
    %60 = arith.select %57, %55, %59 : vector<16x128xi1>, vector<16x128xf32>
    %c0_36 = arith.constant 0 : index
    %c0_37 = arith.constant 0 : index
    %c0_38 = arith.constant 0 : index
    %61 = vector.load %arg10[%c0_36, %c0_37, %c0_38] : memref<3x1x128xf32, #tpu.memory_space<vmem>>, vector<1x1x128xf32>
    %62 = vector.shape_cast %61 : vector<1x1x128xf32> to vector<1x128xf32>
    %c0_39 = arith.constant 0 : index
    %c0_40 = arith.constant 0 : index
    %c0_41 = arith.constant 0 : index
    %63 = vector.load %arg11[%c0_39, %c0_40, %c0_41] : memref<3x1x128xf32, #tpu.memory_space<vmem>>, vector<1x1x128xf32>
    %64 = vector.shape_cast %63 : vector<1x1x128xf32> to vector<1x128xf32>
    %cst_42 = arith.constant dense<0.000000e+00> : vector<16xf32>
    %65 = vector.multi_reduction <add>, %60, %cst_42 [1] : vector<16x128xf32> to vector<16xf32>
    %66 = vector.shape_cast %65 : vector<16xf32> to vector<16x1xf32>
    %cst_43 = arith.constant 1.280000e+02 : f32
    %67 = vector.broadcast %cst_43 : f32 to vector<16x1xf32>
    %68 = arith.divf %66, %67 : vector<16x1xf32>
    %69 = arith.mulf %60, %60 : vector<16x128xf32>
    %cst_44 = arith.constant dense<0.000000e+00> : vector<16xf32>
    %70 = vector.multi_reduction <add>, %69, %cst_44 [1] : vector<16x128xf32> to vector<16xf32>
    %71 = vector.shape_cast %70 : vector<16xf32> to vector<16x1xf32>
    %cst_45 = arith.constant 1.280000e+02 : f32
    %72 = vector.broadcast %cst_45 : f32 to vector<16x1xf32>
    %73 = arith.divf %71, %72 : vector<16x1xf32>
    %74 = arith.mulf %68, %68 : vector<16x1xf32>
    %75 = arith.subf %73, %74 : vector<16x1xf32>
    %76 = vector.broadcast %68 : vector<16x1xf32> to vector<16x128xf32>
    %77 = arith.subf %60, %76 : vector<16x128xf32>
    %cst_46 = arith.constant 9.99999974E-6 : f32
    %78 = vector.broadcast %cst_46 : f32 to vector<16x1xf32>
    %79 = arith.addf %75, %78 : vector<16x1xf32>
    %80 = math.rsqrt %79 : vector<16x1xf32>
    %81 = vector.broadcast %80 : vector<16x1xf32> to vector<16x128xf32>
    %82 = arith.mulf %77, %81 : vector<16x128xf32>
    %83 = vector.broadcast %62 : vector<1x128xf32> to vector<16x128xf32>
    %84 = arith.mulf %82, %83 : vector<16x128xf32>
    %85 = vector.broadcast %64 : vector<1x128xf32> to vector<16x128xf32>
    %86 = arith.addf %84, %85 : vector<16x128xf32>
    %87 = arith.addf %10, %86 : vector<16x128xf32>
    %c1 = arith.constant 1 : index
    %c0_47 = arith.constant 0 : index
    %c0_48 = arith.constant 0 : index
    %88 = vector.load %arg4[%c1, %c0_47, %c0_48] : memref<3x128x128xf32, #tpu.memory_space<vmem>>, vector<1x128x128xf32>
    %89 = vector.shape_cast %88 : vector<1x128x128xf32> to vector<128x128xf32>
    %cst_49 = arith.constant dense<0.000000e+00> : vector<16x128xf32>
    %90 = tpu.matmul %87, %89, %cst_49 {dimension_numbers = #tpu.dot_dimension_numbers<[1], [0], [0], [1], [0, 0, 1, 1], [], []>} : vector<16x128xf32>, vector<128x128xf32>, vector<16x128xf32> -> vector<16x128xf32>
    %c1_50 = arith.constant 1 : index
    %c0_51 = arith.constant 0 : index
    %c0_52 = arith.constant 0 : index
    %91 = vector.load %arg5[%c1_50, %c0_51, %c0_52] : memref<3x1x128xf32, #tpu.memory_space<vmem>>, vector<1x1x128xf32>
    %92 = vector.shape_cast %91 : vector<1x1x128xf32> to vector<1x128xf32>
    %93 = vector.broadcast %92 : vector<1x128xf32> to vector<16x128xf32>
    %94 = arith.addf %90, %93 : vector<16x128xf32>
    %cst_53 = arith.constant 0.000000e+00 : f32
    %95 = vector.broadcast %cst_53 : f32 to vector<16x128xf32>
    %96 = arith.cmpf oge, %94, %95 : vector<16x128xf32>
    %cst_54 = arith.constant 0.00999999977 : f32
    %97 = vector.broadcast %cst_54 : f32 to vector<16x128xf32>
    %98 = arith.mulf %97, %94 : vector<16x128xf32>
    %99 = arith.select %96, %94, %98 : vector<16x128xi1>, vector<16x128xf32>
    %c1_55 = arith.constant 1 : index
    %c0_56 = arith.constant 0 : index
    %c0_57 = arith.constant 0 : index
    %100 = vector.load %arg6[%c1_55, %c0_56, %c0_57] : memref<3x1x128xf32, #tpu.memory_space<vmem>>, vector<1x1x128xf32>
    %101 = vector.shape_cast %100 : vector<1x1x128xf32> to vector<1x128xf32>
    %c1_58 = arith.constant 1 : index
    %c0_59 = arith.constant 0 : index
    %c0_60 = arith.constant 0 : index
    %102 = vector.load %arg7[%c1_58, %c0_59, %c0_60] : memref<3x1x128xf32, #tpu.memory_space<vmem>>, vector<1x1x128xf32>
    %103 = vector.shape_cast %102 : vector<1x1x128xf32> to vector<1x128xf32>
    %cst_61 = arith.constant dense<0.000000e+00> : vector<16xf32>
    %104 = vector.multi_reduction <add>, %99, %cst_61 [1] : vector<16x128xf32> to vector<16xf32>
    %105 = vector.shape_cast %104 : vector<16xf32> to vector<16x1xf32>
    %cst_62 = arith.constant 1.280000e+02 : f32
    %106 = vector.broadcast %cst_62 : f32 to vector<16x1xf32>
    %107 = arith.divf %105, %106 : vector<16x1xf32>
    %108 = arith.mulf %99, %99 : vector<16x128xf32>
    %cst_63 = arith.constant dense<0.000000e+00> : vector<16xf32>
    %109 = vector.multi_reduction <add>, %108, %cst_63 [1] : vector<16x128xf32> to vector<16xf32>
    %110 = vector.shape_cast %109 : vector<16xf32> to vector<16x1xf32>
    %cst_64 = arith.constant 1.280000e+02 : f32
    %111 = vector.broadcast %cst_64 : f32 to vector<16x1xf32>
    %112 = arith.divf %110, %111 : vector<16x1xf32>
    %113 = arith.mulf %107, %107 : vector<16x1xf32>
    %114 = arith.subf %112, %113 : vector<16x1xf32>
    %115 = vector.broadcast %107 : vector<16x1xf32> to vector<16x128xf32>
    %116 = arith.subf %99, %115 : vector<16x128xf32>
    %cst_65 = arith.constant 9.99999974E-6 : f32
    %117 = vector.broadcast %cst_65 : f32 to vector<16x1xf32>
    %118 = arith.addf %114, %117 : vector<16x1xf32>
    %119 = math.rsqrt %118 : vector<16x1xf32>
    %120 = vector.broadcast %119 : vector<16x1xf32> to vector<16x128xf32>
    %121 = arith.mulf %116, %120 : vector<16x128xf32>
    %122 = vector.broadcast %101 : vector<1x128xf32> to vector<16x128xf32>
    %123 = arith.mulf %121, %122 : vector<16x128xf32>
    %124 = vector.broadcast %103 : vector<1x128xf32> to vector<16x128xf32>
    %125 = arith.addf %123, %124 : vector<16x128xf32>
    %c1_66 = arith.constant 1 : index
    %c0_67 = arith.constant 0 : index
    %c0_68 = arith.constant 0 : index
    %126 = vector.load %arg8[%c1_66, %c0_67, %c0_68] : memref<3x128x128xf32, #tpu.memory_space<vmem>>, vector<1x128x128xf32>
    %127 = vector.shape_cast %126 : vector<1x128x128xf32> to vector<128x128xf32>
    %cst_69 = arith.constant dense<0.000000e+00> : vector<16x128xf32>
    %128 = tpu.matmul %125, %127, %cst_69 {dimension_numbers = #tpu.dot_dimension_numbers<[1], [0], [0], [1], [0, 0, 1, 1], [], []>} : vector<16x128xf32>, vector<128x128xf32>, vector<16x128xf32> -> vector<16x128xf32>
    %c1_70 = arith.constant 1 : index
    %c0_71 = arith.constant 0 : index
    %c0_72 = arith.constant 0 : index
    %129 = vector.load %arg9[%c1_70, %c0_71, %c0_72] : memref<3x1x128xf32, #tpu.memory_space<vmem>>, vector<1x1x128xf32>
    %130 = vector.shape_cast %129 : vector<1x1x128xf32> to vector<1x128xf32>
    %131 = vector.broadcast %130 : vector<1x128xf32> to vector<16x128xf32>
    %132 = arith.addf %128, %131 : vector<16x128xf32>
    %cst_73 = arith.constant 0.000000e+00 : f32
    %133 = vector.broadcast %cst_73 : f32 to vector<16x128xf32>
    %134 = arith.cmpf oge, %132, %133 : vector<16x128xf32>
    %cst_74 = arith.constant 0.00999999977 : f32
    %135 = vector.broadcast %cst_74 : f32 to vector<16x128xf32>
    %136 = arith.mulf %135, %132 : vector<16x128xf32>
    %137 = arith.select %134, %132, %136 : vector<16x128xi1>, vector<16x128xf32>
    %c1_75 = arith.constant 1 : index
    %c0_76 = arith.constant 0 : index
    %c0_77 = arith.constant 0 : index
    %138 = vector.load %arg10[%c1_75, %c0_76, %c0_77] : memref<3x1x128xf32, #tpu.memory_space<vmem>>, vector<1x1x128xf32>
    %139 = vector.shape_cast %138 : vector<1x1x128xf32> to vector<1x128xf32>
    %c1_78 = arith.constant 1 : index
    %c0_79 = arith.constant 0 : index
    %c0_80 = arith.constant 0 : index
    %140 = vector.load %arg11[%c1_78, %c0_79, %c0_80] : memref<3x1x128xf32, #tpu.memory_space<vmem>>, vector<1x1x128xf32>
    %141 = vector.shape_cast %140 : vector<1x1x128xf32> to vector<1x128xf32>
    %cst_81 = arith.constant dense<0.000000e+00> : vector<16xf32>
    %142 = vector.multi_reduction <add>, %137, %cst_81 [1] : vector<16x128xf32> to vector<16xf32>
    %143 = vector.shape_cast %142 : vector<16xf32> to vector<16x1xf32>
    %cst_82 = arith.constant 1.280000e+02 : f32
    %144 = vector.broadcast %cst_82 : f32 to vector<16x1xf32>
    %145 = arith.divf %143, %144 : vector<16x1xf32>
    %146 = arith.mulf %137, %137 : vector<16x128xf32>
    %cst_83 = arith.constant dense<0.000000e+00> : vector<16xf32>
    %147 = vector.multi_reduction <add>, %146, %cst_83 [1] : vector<16x128xf32> to vector<16xf32>
    %148 = vector.shape_cast %147 : vector<16xf32> to vector<16x1xf32>
    %cst_84 = arith.constant 1.280000e+02 : f32
    %149 = vector.broadcast %cst_84 : f32 to vector<16x1xf32>
    %150 = arith.divf %148, %149 : vector<16x1xf32>
    %151 = arith.mulf %145, %145 : vector<16x1xf32>
    %152 = arith.subf %150, %151 : vector<16x1xf32>
    %153 = vector.broadcast %145 : vector<16x1xf32> to vector<16x128xf32>
    %154 = arith.subf %137, %153 : vector<16x128xf32>
    %cst_85 = arith.constant 9.99999974E-6 : f32
    %155 = vector.broadcast %cst_85 : f32 to vector<16x1xf32>
    %156 = arith.addf %152, %155 : vector<16x1xf32>
    %157 = math.rsqrt %156 : vector<16x1xf32>
    %158 = vector.broadcast %157 : vector<16x1xf32> to vector<16x128xf32>
    %159 = arith.mulf %154, %158 : vector<16x128xf32>
    %160 = vector.broadcast %139 : vector<1x128xf32> to vector<16x128xf32>
    %161 = arith.mulf %159, %160 : vector<16x128xf32>
    %162 = vector.broadcast %141 : vector<1x128xf32> to vector<16x128xf32>
    %163 = arith.addf %161, %162 : vector<16x128xf32>
    %164 = arith.addf %87, %163 : vector<16x128xf32>
    %c2 = arith.constant 2 : index
    %c0_86 = arith.constant 0 : index
    %c0_87 = arith.constant 0 : index
    %165 = vector.load %arg4[%c2, %c0_86, %c0_87] : memref<3x128x128xf32, #tpu.memory_space<vmem>>, vector<1x128x128xf32>
    %166 = vector.shape_cast %165 : vector<1x128x128xf32> to vector<128x128xf32>
    %cst_88 = arith.constant dense<0.000000e+00> : vector<16x128xf32>
    %167 = tpu.matmul %164, %166, %cst_88 {dimension_numbers = #tpu.dot_dimension_numbers<[1], [0], [0], [1], [0, 0, 1, 1], [], []>} : vector<16x128xf32>, vector<128x128xf32>, vector<16x128xf32> -> vector<16x128xf32>
    %c2_89 = arith.constant 2 : index
    %c0_90 = arith.constant 0 : index
    %c0_91 = arith.constant 0 : index
    %168 = vector.load %arg5[%c2_89, %c0_90, %c0_91] : memref<3x1x128xf32, #tpu.memory_space<vmem>>, vector<1x1x128xf32>
    %169 = vector.shape_cast %168 : vector<1x1x128xf32> to vector<1x128xf32>
    %170 = vector.broadcast %169 : vector<1x128xf32> to vector<16x128xf32>
    %171 = arith.addf %167, %170 : vector<16x128xf32>
    %cst_92 = arith.constant 0.000000e+00 : f32
    %172 = vector.broadcast %cst_92 : f32 to vector<16x128xf32>
    %173 = arith.cmpf oge, %171, %172 : vector<16x128xf32>
    %cst_93 = arith.constant 0.00999999977 : f32
    %174 = vector.broadcast %cst_93 : f32 to vector<16x128xf32>
    %175 = arith.mulf %174, %171 : vector<16x128xf32>
    %176 = arith.select %173, %171, %175 : vector<16x128xi1>, vector<16x128xf32>
    %c2_94 = arith.constant 2 : index
    %c0_95 = arith.constant 0 : index
    %c0_96 = arith.constant 0 : index
    %177 = vector.load %arg6[%c2_94, %c0_95, %c0_96] : memref<3x1x128xf32, #tpu.memory_space<vmem>>, vector<1x1x128xf32>
    %178 = vector.shape_cast %177 : vector<1x1x128xf32> to vector<1x128xf32>
    %c2_97 = arith.constant 2 : index
    %c0_98 = arith.constant 0 : index
    %c0_99 = arith.constant 0 : index
    %179 = vector.load %arg7[%c2_97, %c0_98, %c0_99] : memref<3x1x128xf32, #tpu.memory_space<vmem>>, vector<1x1x128xf32>
    %180 = vector.shape_cast %179 : vector<1x1x128xf32> to vector<1x128xf32>
    %cst_100 = arith.constant dense<0.000000e+00> : vector<16xf32>
    %181 = vector.multi_reduction <add>, %176, %cst_100 [1] : vector<16x128xf32> to vector<16xf32>
    %182 = vector.shape_cast %181 : vector<16xf32> to vector<16x1xf32>
    %cst_101 = arith.constant 1.280000e+02 : f32
    %183 = vector.broadcast %cst_101 : f32 to vector<16x1xf32>
    %184 = arith.divf %182, %183 : vector<16x1xf32>
    %185 = arith.mulf %176, %176 : vector<16x128xf32>
    %cst_102 = arith.constant dense<0.000000e+00> : vector<16xf32>
    %186 = vector.multi_reduction <add>, %185, %cst_102 [1] : vector<16x128xf32> to vector<16xf32>
    %187 = vector.shape_cast %186 : vector<16xf32> to vector<16x1xf32>
    %cst_103 = arith.constant 1.280000e+02 : f32
    %188 = vector.broadcast %cst_103 : f32 to vector<16x1xf32>
    %189 = arith.divf %187, %188 : vector<16x1xf32>
    %190 = arith.mulf %184, %184 : vector<16x1xf32>
    %191 = arith.subf %189, %190 : vector<16x1xf32>
    %192 = vector.broadcast %184 : vector<16x1xf32> to vector<16x128xf32>
    %193 = arith.subf %176, %192 : vector<16x128xf32>
    %cst_104 = arith.constant 9.99999974E-6 : f32
    %194 = vector.broadcast %cst_104 : f32 to vector<16x1xf32>
    %195 = arith.addf %191, %194 : vector<16x1xf32>
    %196 = math.rsqrt %195 : vector<16x1xf32>
    %197 = vector.broadcast %196 : vector<16x1xf32> to vector<16x128xf32>
    %198 = arith.mulf %193, %197 : vector<16x128xf32>
    %199 = vector.broadcast %178 : vector<1x128xf32> to vector<16x128xf32>
    %200 = arith.mulf %198, %199 : vector<16x128xf32>
    %201 = vector.broadcast %180 : vector<1x128xf32> to vector<16x128xf32>
    %202 = arith.addf %200, %201 : vector<16x128xf32>
    %c2_105 = arith.constant 2 : index
    %c0_106 = arith.constant 0 : index
    %c0_107 = arith.constant 0 : index
    %203 = vector.load %arg8[%c2_105, %c0_106, %c0_107] : memref<3x128x128xf32, #tpu.memory_space<vmem>>, vector<1x128x128xf32>
    %204 = vector.shape_cast %203 : vector<1x128x128xf32> to vector<128x128xf32>
    %cst_108 = arith.constant dense<0.000000e+00> : vector<16x128xf32>
    %205 = tpu.matmul %202, %204, %cst_108 {dimension_numbers = #tpu.dot_dimension_numbers<[1], [0], [0], [1], [0, 0, 1, 1], [], []>} : vector<16x128xf32>, vector<128x128xf32>, vector<16x128xf32> -> vector<16x128xf32>
    %c2_109 = arith.constant 2 : index
    %c0_110 = arith.constant 0 : index
    %c0_111 = arith.constant 0 : index
    %206 = vector.load %arg9[%c2_109, %c0_110, %c0_111] : memref<3x1x128xf32, #tpu.memory_space<vmem>>, vector<1x1x128xf32>
    %207 = vector.shape_cast %206 : vector<1x1x128xf32> to vector<1x128xf32>
    %208 = vector.broadcast %207 : vector<1x128xf32> to vector<16x128xf32>
    %209 = arith.addf %205, %208 : vector<16x128xf32>
    %cst_112 = arith.constant 0.000000e+00 : f32
    %210 = vector.broadcast %cst_112 : f32 to vector<16x128xf32>
    %211 = arith.cmpf oge, %209, %210 : vector<16x128xf32>
    %cst_113 = arith.constant 0.00999999977 : f32
    %212 = vector.broadcast %cst_113 : f32 to vector<16x128xf32>
    %213 = arith.mulf %212, %209 : vector<16x128xf32>
    %214 = arith.select %211, %209, %213 : vector<16x128xi1>, vector<16x128xf32>
    %c2_114 = arith.constant 2 : index
    %c0_115 = arith.constant 0 : index
    %c0_116 = arith.constant 0 : index
    %215 = vector.load %arg10[%c2_114, %c0_115, %c0_116] : memref<3x1x128xf32, #tpu.memory_space<vmem>>, vector<1x1x128xf32>
    %216 = vector.shape_cast %215 : vector<1x1x128xf32> to vector<1x128xf32>
    %c2_117 = arith.constant 2 : index
    %c0_118 = arith.constant 0 : index
    %c0_119 = arith.constant 0 : index
    %217 = vector.load %arg11[%c2_117, %c0_118, %c0_119] : memref<3x1x128xf32, #tpu.memory_space<vmem>>, vector<1x1x128xf32>
    %218 = vector.shape_cast %217 : vector<1x1x128xf32> to vector<1x128xf32>
    %cst_120 = arith.constant dense<0.000000e+00> : vector<16xf32>
    %219 = vector.multi_reduction <add>, %214, %cst_120 [1] : vector<16x128xf32> to vector<16xf32>
    %220 = vector.shape_cast %219 : vector<16xf32> to vector<16x1xf32>
    %cst_121 = arith.constant 1.280000e+02 : f32
    %221 = vector.broadcast %cst_121 : f32 to vector<16x1xf32>
    %222 = arith.divf %220, %221 : vector<16x1xf32>
    %223 = arith.mulf %214, %214 : vector<16x128xf32>
    %cst_122 = arith.constant dense<0.000000e+00> : vector<16xf32>
    %224 = vector.multi_reduction <add>, %223, %cst_122 [1] : vector<16x128xf32> to vector<16xf32>
    %225 = vector.shape_cast %224 : vector<16xf32> to vector<16x1xf32>
    %cst_123 = arith.constant 1.280000e+02 : f32
    %226 = vector.broadcast %cst_123 : f32 to vector<16x1xf32>
    %227 = arith.divf %225, %226 : vector<16x1xf32>
    %228 = arith.mulf %222, %222 : vector<16x1xf32>
    %229 = arith.subf %227, %228 : vector<16x1xf32>
    %230 = vector.broadcast %222 : vector<16x1xf32> to vector<16x128xf32>
    %231 = arith.subf %214, %230 : vector<16x128xf32>
    %cst_124 = arith.constant 9.99999974E-6 : f32
    %232 = vector.broadcast %cst_124 : f32 to vector<16x1xf32>
    %233 = arith.addf %229, %232 : vector<16x1xf32>
    %234 = math.rsqrt %233 : vector<16x1xf32>
    %235 = vector.broadcast %234 : vector<16x1xf32> to vector<16x128xf32>
    %236 = arith.mulf %231, %235 : vector<16x128xf32>
    %237 = vector.broadcast %216 : vector<1x128xf32> to vector<16x128xf32>
    %238 = arith.mulf %236, %237 : vector<16x128xf32>
    %239 = vector.broadcast %218 : vector<1x128xf32> to vector<16x128xf32>
    %240 = arith.addf %238, %239 : vector<16x128xf32>
    %241 = arith.addf %164, %240 : vector<16x128xf32>
    %c0_125 = arith.constant 0 : index
    %c0_126 = arith.constant 0 : index
    %242 = vector.load %arg12[%c0_125, %c0_126] : memref<128x16xf32, #tpu.memory_space<vmem>>, vector<128x16xf32>
    %cst_127 = arith.constant dense<0.000000e+00> : vector<16x16xf32>
    %243 = tpu.matmul %241, %242, %cst_127 {dimension_numbers = #tpu.dot_dimension_numbers<[1], [0], [0], [1], [0, 0, 1, 1], [], []>} : vector<16x128xf32>, vector<128x16xf32>, vector<16x16xf32> -> vector<16x16xf32>
    %c0_128 = arith.constant 0 : index
    %c0_129 = arith.constant 0 : index
    %244 = vector.load %arg13[%c0_128, %c0_129] : memref<1x16xf32, #tpu.memory_space<vmem>>, vector<1x16xf32>
    %245 = vector.broadcast %244 : vector<1x16xf32> to vector<16x16xf32>
    %246 = arith.addf %243, %245 : vector<16x16xf32>
    %c0_130 = arith.constant 0 : index
    %c0_131 = arith.constant 0 : index
    %247 = vector.load %arg14[%c0_130, %c0_131] : memref<16x16xf32, #tpu.memory_space<vmem>>, vector<16x16xf32>
    tpu.vector_store %arg14[%c0_130, %c0_131], %246 {strides = array<i32>} : memref<16x16xf32, #tpu.memory_space<vmem>>, vector<16x16xf32>,
    return
  }
  func.func @transform_0(%arg0: i32) -> (i32, i32) {
    %c0_i32 = arith.constant 0 : i32
    %c0_i32_0 = arith.constant 0 : i32
    return %arg0, %c0_i32 : i32, i32
  }
  func.func @transform_1(%arg0: i32) -> (i32, i32) {
    %c0_i32 = arith.constant 0 : i32
    %c0_i32_0 = arith.constant 0 : i32
    %c0_i32_1 = arith.constant 0 : i32
    return %c0_i32, %c0_i32_0 : i32, i32
  }
  func.func @transform_2(%arg0: i32) -> (i32, i32) {
    %c0_i32 = arith.constant 0 : i32
    %c0_i32_0 = arith.constant 0 : i32
    %c0_i32_1 = arith.constant 0 : i32
    return %c0_i32, %c0_i32_0 : i32, i32
  }
  func.func @transform_3(%arg0: i32) -> (i32, i32, i32) {
    %c0_i32 = arith.constant 0 : i32
    %c0_i32_0 = arith.constant 0 : i32
    %c0_i32_1 = arith.constant 0 : i32
    %c0_i32_2 = arith.constant 0 : i32
    return %c0_i32, %c0_i32_0, %c0_i32_1 : i32, i32, i32
  }
  func.func @transform_4(%arg0: i32) -> (i32, i32, i32) {
    %c0_i32 = arith.constant 0 : i32
    %c0_i32_0 = arith.constant 0 : i32
    %c0_i32_1 = arith.constant 0 : i32
    %c0_i32_2 = arith.constant 0 : i32
    return %c0_i32, %c0_i32_0, %c0_i32_1 : i32, i32, i32
  }
  func.func @transform_5(%arg0: i32) -> (i32, i32, i32) {
    %c0_i32 = arith.constant 0 : i32
    %c0_i32_0 = arith.constant 0 : i32
    %c0_i32_1 = arith.constant 0 : i32
    %c0_i32_2 = arith.constant 0 : i32
    return %c0_i32, %c0_i32_0, %c0_i32_1 : i32, i32, i32
  }
  func.func @transform_6(%arg0: i32) -> (i32, i32, i32) {
    %c0_i32 = arith.constant 0 : i32
    %c0_i32_0 = arith.constant 0 : i32
    %c0_i32_1 = arith.constant 0 : i32
    %c0_i32_2 = arith.constant 0 : i32
    return %c0_i32, %c0_i32_0, %c0_i32_1 : i32, i32, i32
  }
  func.func @transform_7(%arg0: i32) -> (i32, i32, i32) {
    %c0_i32 = arith.constant 0 : i32
    %c0_i32_0 = arith.constant 0 : i32
    %c0_i32_1 = arith.constant 0 : i32
    %c0_i32_2 = arith.constant 0 : i32
    return %c0_i32, %c0_i32_0, %c0_i32_1 : i32, i32, i32
  }
  func.func @transform_8(%arg0: i32) -> (i32, i32, i32) {
    %c0_i32 = arith.constant 0 : i32
    %c0_i32_0 = arith.constant 0 : i32
    %c0_i32_1 = arith.constant 0 : i32
    %c0_i32_2 = arith.constant 0 : i32
    return %c0_i32, %c0_i32_0, %c0_i32_1 : i32, i32, i32
  }
  func.func @transform_9(%arg0: i32) -> (i32, i32, i32) {
    %c0_i32 = arith.constant 0 : i32
    %c0_i32_0 = arith.constant 0 : i32
    %c0_i32_1 = arith.constant 0 : i32
    %c0_i32_2 = arith.constant 0 : i32
    return %c0_i32, %c0_i32_0, %c0_i32_1 : i32, i32, i32
  }
  func.func @transform_10(%arg0: i32) -> (i32, i32, i32) {
    %c0_i32 = arith.constant 0 : i32
    %c0_i32_0 = arith.constant 0 : i32
    %c0_i32_1 = arith.constant 0 : i32
    %c0_i32_2 = arith.constant 0 : i32
    return %c0_i32, %c0_i32_0, %c0_i32_1 : i32, i32, i32
  }
  func.func @transform_11(%arg0: i32) -> (i32, i32) {
    %c0_i32 = arith.constant 0 : i32
    %c0_i32_0 = arith.constant 0 : i32
    %c0_i32_1 = arith.constant 0 : i32
    return %c0_i32, %c0_i32_0 : i32, i32
  }
  func.func @transform_12(%arg0: i32) -> (i32, i32) {
    %c0_i32 = arith.constant 0 : i32
    %c0_i32_0 = arith.constant 0 : i32
    %c0_i32_1 = arith.constant 0 : i32
    return %c0_i32, %c0_i32_0 : i32, i32
  }
  func.func @transform_13(%arg0: i32) -> (i32, i32) {
    %c0_i32 = arith.constant 0 : i32
    %c0_i32_0 = arith.constant 0 : i32
    return %arg0, %c0_i32 : i32, i32
  }
}

</mosaic_0001>

<bundles_post_ra>
// kernel: tpu_custom_call.1
= control target key start
LH: loop header
LB: loop body
LE: loop exit
PB: predicated region body
PF: predicated region fallthrough
CT: control target
= control target key end

     0   :  { %18 = vsyncpa [#allocation3], 0  ;;  %s2788_s0 = inlined_call_operand.hbm [shape: f32[16,32], index: 0, kind: input, shape index: {}]   ;;  %s2789_s1 = inlined_call_operand.hbm [shape: f32[32,128], index: 1, kind: input, shape index: {}]   ;;  %s2790_s2 = inlined_call_operand.hbm [shape: f32[1,128], index: 2, kind: input, shape index: {}]   ;;  %s2791_s3 = inlined_call_operand.hbm [shape: f32[3,128,128], index: 3, kind: input, shape index: {}]   ;;  %s2792_s4 = inlined_call_operand.hbm [shape: f32[3,1,128], index: 4, kind: input, shape index: {}]   ;;  %s2793_s5 = inlined_call_operand.hbm [shape: f32[3,1,128], index: 5, kind: input, shape index: {}]   ;;  %s2794_s6 = inlined_call_operand.hbm [shape: f32[3,1,128], index: 6, kind: input, shape index: {}]   ;;  %s2795_s7 = inlined_call_operand.hbm [shape: f32[3,128,128], index: 7, kind: input, shape index: {}]   ;;  %s2796_s8 = inlined_call_operand.hbm [shape: f32[3,1,128], index: 8, kind: input, shape index: {}]   ;;  %s2797_s9 = inlined_call_operand.hbm [shape: f32[3,1,128], index: 9, kind: input, shape index: {}]   ;;  %s2798_s10 = inlined_call_operand.hbm [shape: f32[3,1,128], index: 10, kind: input, shape index: {}]   ;;  %s2799_s11 = inlined_call_operand.hbm [shape: f32[128,16], index: 11, kind: input, shape index: {}]   ;;  %s2800_s12 = inlined_call_operand.hbm [shape: f32[1,16], index: 12, kind: input, shape index: {}]   ;;  %s2801_s13 = inlined_call_operand.hbm [shape: f32[16,16], index: 13, kind: output, shape index: {}]  }
   0x1   :  { %19 = vsyncpa [#allocation6], 0 }
   0x2   :  { %20 = vsyncpa [#allocation9], 0 }
   0x3   :  { %21 = vsyncpa [#allocation12], 0 }
   0x4   :  { %22 = vsyncpa [#allocation15], 0 }
   0x5   :  { %23 = vsyncpa [#allocation18], 0 }
   0x6   :  { %24 = vsyncpa [#allocation21], 0 }
   0x7   :  { %25 = vsyncpa [#allocation4], 0  ;;  %s2361_s25 = smov [#allocation5]   ;;  %s2362_s27 = smov [#allocation8]  }
   0x8   :  { %s43_s26 = sshll.u32 %s2361_s25, 4  ;;  %s65_s28 = sshll.u32 %s2362_s27, 4  ;;  %s44_s26 = int_to_ptr.vmem [resolvable:$true] %s43_s26  ;;  %s2449_s28 = int_to_ptr.vmem [resolvable:$true] %s65_s28 }
   0x9   :  { %s2037_s14 = scalar_lea.hbm %s2789_s1, 512 }
   0xa   :  { %p2038_p0 = scmp.ne.s32.totalorder %s2789_s1, %s2037_s14  ;;  %p2041_p1 = scmp.lt.u32.totalorder %s2037_s14, %s2789_s1 }
   0xc   :  { %p2043_p2 = pnand %p2041_p1, %p2038_p0 }
   0xe   :  { %2046 = shalt.err (!%p2043_p2)
}
   0xf   :  { %s2047_s19 = scalar_lea.vmem %s44_s26, 512  ;;  %p2052_p4 = scmp.lt.s32.totalorder %s44_s26, %s44_s26 }
  0x10   :  { %p2048_p3 = scmp.ne.s32.totalorder %s44_s26, %s2047_s19  ;;  %p2053_p5 = scmp.lt.s32.totalorder %s2047_s19, %s2047_s19 }
  0x12   :  { %p2054_p6 = por %p2053_p5, %p2052_p4 }
  0x14   :  { %p2055_p7 = pnand %p2054_p6, %p2048_p3 }
  0x16   :  { %2058 = shalt.err (!%p2055_p7)
}
  0x17   :  { %s2363_s20 = smov 128   ;;  %s2364_s21 = smov 8  }
  0x18   :  { %49 = dma.hbm_to_vmem [thread:$0]  %s2789_s1, 512, %s44_s26, [#allocation6], %s2363_s20, %s2363_s20, %s2364_s21  }
  0x19   :  { %s2059_s27 = scalar_lea.hbm %s2791_s3, 6144 }
  0x1a   :  { %p2060_p8 = scmp.ne.s32.totalorder %s2791_s3, %s2059_s27  ;;  %p2063_p9 = scmp.lt.u32.totalorder %s2059_s27, %s2791_s3 }
  0x1c   :  { %p2065_p10 = pnand %p2063_p9, %p2060_p8 }
  0x1e   :  { %2068 = shalt.err (!%p2065_p10)
}
  0x1f   :  { %s2069_s16 = scalar_lea.vmem %s2449_s28, 6144  ;;  %p2074_p12 = scmp.lt.s32.totalorder %s2449_s28, %s2449_s28 }
  0x20   :  { %p2070_p11 = scmp.ne.s32.totalorder %s2449_s28, %s2069_s16  ;;  %p2075_p13 = scmp.lt.s32.totalorder %s2069_s16, %s2069_s16 }
  0x22   :  { %p2076_p0 = por %p2075_p13, %p2074_p12 }
  0x24   :  { %p2077_p1 = pnand %p2076_p0, %p2070_p11 }
  0x26   :  { %2080 = shalt.err (!%p2077_p1)
}
  0x27   :  { %71 = dma.hbm_to_vmem [thread:$0]  %s2791_s3, 6144, %s2449_s28, [#allocation9], %s2363_s20, %s2363_s20, %s2364_s21  }
  0x28   :  { %s2365_s17 = smov [#allocation11]   ;;  %s2366_s19 = smov [#allocation14]  }
  0x29   :  { %s89_s18 = sshll.u32 %s2365_s17, 4  ;;  %s113_s22 = sshll.u32 %s2366_s19, 4  ;;  %s90_s18 = int_to_ptr.vmem [resolvable:$true] %s89_s18  ;;  %s2486_s22 = int_to_ptr.vmem [resolvable:$true] %s113_s22 }
  0x2a   :  { %s2081_s25 = scalar_lea.hbm %s2793_s5, 48 }
  0x2b   :  { %p2082_p2 = scmp.ne.s32.totalorder %s2793_s5, %s2081_s25  ;;  %p2085_p3 = scmp.lt.u32.totalorder %s2081_s25, %s2793_s5 }
  0x2d   :  { %p2087_p4 = pnand %p2085_p3, %p2082_p2 }
  0x2f   :  { %2090 = shalt.err (!%p2087_p4)
}
  0x30   :  { %s2091_s3 = scalar_lea.vmem %s90_s18, 48  ;;  %s2095_s28 = scalar_lea.vmem %s90_s18, 64 }
  0x31   :  { %p2092_p5 = scmp.ne.s32.totalorder %s90_s18, %s2091_s3  ;;  %p2096_p6 = scmp.lt.s32.totalorder %s90_s18, %s90_s18 }
  0x32   :  { %p2097_p7 = scmp.lt.s32.totalorder %s2095_s28, %s2091_s3 }
  0x34   :  { %p2098_p8 = por %p2097_p7, %p2096_p6 }
  0x36   :  { %p2099_p9 = pnand %p2098_p8, %p2092_p5 }
  0x38   :  { %2102 = shalt.err (!%p2099_p9)
}
  0x39   :  { %s2367_s15 = smov 16   ;;  %s2368_s16 = smov 1  }
  0x3a   :  { %95 = dma.hbm_to_vmem [thread:$0]  %s2793_s5, 48, %s90_s18, [#allocation12], %s2367_s15, %s2367_s15, %s2368_s16  }
  0x3b   :  { %s2103_s23 = scalar_lea.hbm %s2795_s7, 6144 }
  0x3c   :  { %p2104_p10 = scmp.ne.s32.totalorder %s2795_s7, %s2103_s23  ;;  %p2107_p11 = scmp.lt.u32.totalorder %s2103_s23, %s2795_s7 }
  0x3e   :  { %p2109_p12 = pnand %p2107_p11, %p2104_p10 }
  0x40   :  { %2112 = shalt.err (!%p2109_p12)
}
  0x41   :  { %s2113_s30 = scalar_lea.vmem %s2486_s22, 6144  ;;  %p2118_p0 = scmp.lt.s32.totalorder %s2486_s22, %s2486_s22 }
  0x42   :  { %p2114_p13 = scmp.ne.s32.totalorder %s2486_s22, %s2113_s30  ;;  %p2119_p1 = scmp.lt.s32.totalorder %s2113_s30, %s2113_s30 }
  0x44   :  { %p2120_p2 = por %p2119_p1, %p2118_p0 }
  0x46   :  { %p2121_p3 = pnand %p2120_p2, %p2114_p13 }
  0x48   :  { %2124 = shalt.err (!%p2121_p3)
}
  0x49   :  { %119 = dma.hbm_to_vmem [thread:$0]  %s2795_s7, 6144, %s2486_s22, [#allocation15], %s2363_s20, %s2363_s20, %s2364_s21  }
  0x4a   :  { %s2369_s14 = smov [#allocation17]   ;;  %s2370_s28 = smov [#allocation20]  }
  0x4b   :  { %s137_s3 = sshll.u32 %s2369_s14, 4  ;;  %s161_s1 = sshll.u32 %s2370_s28, 4  ;;  %s138_s3 = int_to_ptr.vmem [resolvable:$true] %s137_s3  ;;  %s2523_s1 = int_to_ptr.vmem [resolvable:$true] %s161_s1 }
  0x4c   :  { %s2125_s19 = scalar_lea.hbm %s2797_s9, 48 }
  0x4d   :  { %p2126_p4 = scmp.ne.s32.totalorder %s2797_s9, %s2125_s19  ;;  %p2129_p5 = scmp.lt.u32.totalorder %s2125_s19, %s2797_s9 }
  0x4f   :  { %p2131_p6 = pnand %p2129_p5, %p2126_p4 }
  0x51   :  { %2134 = shalt.err (!%p2131_p6)
}
  0x52   :  { %s2135_s7 = scalar_lea.vmem %s138_s3, 48  ;;  %s2139_s22 = scalar_lea.vmem %s138_s3, 64 }
  0x53   :  { %p2136_p7 = scmp.ne.s32.totalorder %s138_s3, %s2135_s7  ;;  %p2140_p8 = scmp.lt.s32.totalorder %s138_s3, %s138_s3 }
  0x54   :  { %p2141_p9 = scmp.lt.s32.totalorder %s2139_s22, %s2135_s7 }
  0x56   :  { %p2142_p10 = por %p2141_p9, %p2140_p8 }
  0x58   :  { %p2143_p11 = pnand %p2142_p10, %p2136_p7 }
  0x5a   :  { %2146 = shalt.err (!%p2143_p11)
}
  0x5b   :  { %143 = dma.hbm_to_vmem [thread:$0]  %s2797_s9, 48, %s138_s3, [#allocation18], %s2367_s15, %s2367_s15, %s2368_s16  }
  0x5c   :  { %s2147_s14 = scalar_lea.hbm %s2799_s11, 2048 }
  0x5d   :  { %p2148_p12 = scmp.ne.s32.totalorder %s2799_s11, %s2147_s14  ;;  %p2151_p13 = scmp.lt.u32.totalorder %s2147_s14, %s2799_s11 }
  0x5f   :  { %p2153_p0 = pnand %p2151_p13, %p2148_p12 }
  0x61   :  { %2156 = shalt.err (!%p2153_p0)
}
  0x62   :  { %s2157_s23 = scalar_lea.vmem %s2523_s1, 2048  ;;  %p2162_p2 = scmp.lt.s32.totalorder %s2523_s1, %s2523_s1 }
  0x63   :  { %p2158_p1 = scmp.ne.s32.totalorder %s2523_s1, %s2157_s23  ;;  %p2163_p3 = scmp.lt.s32.totalorder %s2157_s23, %s2157_s23 }
  0x65   :  { %p2164_p4 = por %p2163_p3, %p2162_p2 }
  0x67   :  { %p2165_p5 = pnand %p2164_p4, %p2158_p1 }
  0x69   :  { %2168 = shalt.err (!%p2165_p5)
}
  0x6a   :  { %167 = dma.hbm_to_vmem [thread:$0]  %s2799_s11, 2048, %s2523_s1, [#allocation21], %s2363_s20, %s2363_s20, %s2364_s21  }
  0x6b   :  { %s2371_s24 = smov [#allocation2]   ;;  %s2372_s27 = smov [#allocation7]  }
  0x6c   :  { %s31_s25 = sshll.u32 %s2371_s24, 4  ;;  %s56_s7 = sshll.u32 %s2372_s27, 4  ;;  %s32_s25 = int_to_ptr.vmem [resolvable:$true] %s31_s25  ;;  %s57_s7 = int_to_ptr.vmem [resolvable:$true] %s56_s7 }
  0x6d   :  { %s2169_s30 = scalar_lea.hbm %s2788_s0, 256 }
  0x6e   :  { %p2170_p6 = scmp.ne.s32.totalorder %s2788_s0, %s2169_s30  ;;  %p2173_p7 = scmp.lt.u32.totalorder %s2169_s30, %s2788_s0 }
  0x70   :  { %p2175_p8 = pnand %p2173_p7, %p2170_p6 }
  0x72   :  { %2178 = shalt.err (!%p2175_p8)
}
  0x73   :  { %s2179_s11 = scalar_lea.vmem %s32_s25, 256  ;;  %p2184_p10 = scmp.lt.s32.totalorder %s32_s25, %s32_s25 }
  0x74   :  { %p2180_p9 = scmp.ne.s32.totalorder %s32_s25, %s2179_s11  ;;  %p2185_p11 = scmp.lt.s32.totalorder %s2179_s11, %s2179_s11 }
  0x76   :  { %p2186_p12 = por %p2185_p11, %p2184_p10 }
  0x78   :  { %p2187_p13 = pnand %p2186_p12, %p2180_p9 }
  0x7a   :  { %2190 = shalt.err (!%p2187_p13)
}
  0x7b   :  { %37 = dma.hbm_to_vmem [thread:$0]  %s2788_s0, 256, %s32_s25, [#allocation3], %s2363_s20, %s2363_s20, %s2364_s21  }
  0x7c   :  { %s2191_s23 = scalar_lea.hbm %s2790_s2, 16 }
  0x7d   :  { %p2192_p0 = scmp.ne.s32.totalorder %s2790_s2, %s2191_s23  ;;  %p2195_p1 = scmp.lt.u32.totalorder %s2191_s23, %s2790_s2 }
  0x7f   :  { %p2197_p2 = pnand %p2195_p1, %p2192_p0 }
  0x81   :  { %2200 = shalt.err (!%p2197_p2)
}
  0x82   :  { %s2201_s22 = scalar_lea.vmem %s57_s7, 16  ;;  %s2205_s29 = scalar_lea.vmem %s57_s7, 32 }
  0x83   :  { %p2202_p3 = scmp.ne.s32.totalorder %s57_s7, %s2201_s22  ;;  %p2206_p4 = scmp.lt.s32.totalorder %s57_s7, %s57_s7 }
  0x84   :  { %p2207_p5 = scmp.lt.s32.totalorder %s2205_s29, %s2201_s22 }
  0x86   :  { %p2208_p6 = por %p2207_p5, %p2206_p4 }
  0x88   :  { %p2209_p7 = pnand %p2208_p6, %p2202_p3 }
  0x8a   :  { %2212 = shalt.err (!%p2209_p7)
}
  0x8b   :  { %59 = dma.hbm_to_vmem [thread:$0]  %s2790_s2, 16, %s57_s7, [#allocation6]  }
  0x8c   :  { %s2373_s30 = smov [#allocation10]   ;;  %s2374_s18 = smov [#allocation13]  }
  0x8d   :  { %s77_s5 = sshll.u32 %s2373_s30, 4  ;;  %s101_s14 = sshll.u32 %s2374_s18, 4  ;;  %s78_s5 = int_to_ptr.vmem [resolvable:$true] %s77_s5  ;;  %s2587_s14 = int_to_ptr.vmem [resolvable:$true] %s101_s14 }
  0x8e   :  { %s2213_s1 = scalar_lea.hbm %s2792_s4, 48 }
  0x8f   :  { %p2214_p8 = scmp.ne.s32.totalorder %s2792_s4, %s2213_s1  ;;  %p2217_p9 = scmp.lt.u32.totalorder %s2213_s1, %s2792_s4 }
  0x91   :  { %p2219_p10 = pnand %p2217_p9, %p2214_p8 }
  0x93   :  { %2222 = shalt.err (!%p2219_p10)
}
  0x94   :  { %s2223_s2 = scalar_lea.vmem %s78_s5, 48  ;;  %s2227_s7 = scalar_lea.vmem %s78_s5, 64 }
  0x95   :  { %p2224_p11 = scmp.ne.s32.totalorder %s78_s5, %s2223_s2  ;;  %p2228_p12 = scmp.lt.s32.totalorder %s78_s5, %s78_s5 }
  0x96   :  { %p2229_p13 = scmp.lt.s32.totalorder %s2227_s7, %s2223_s2 }
  0x98   :  { %p2230_p0 = por %p2229_p13, %p2228_p12 }
  0x9a   :  { %p2231_p1 = pnand %p2230_p0, %p2224_p11 }
  0x9c   :  { %2234 = shalt.err (!%p2231_p1)
}
  0x9d   :  { %83 = dma.hbm_to_vmem [thread:$0]  %s2792_s4, 48, %s78_s5, [#allocation9], %s2367_s15, %s2367_s15, %s2368_s16  }
  0x9e   :  { %s2235_s22 = scalar_lea.hbm %s2794_s6, 48 }
  0x9f   :  { %p2236_p2 = scmp.ne.s32.totalorder %s2794_s6, %s2235_s22  ;;  %p2239_p3 = scmp.lt.u32.totalorder %s2235_s22, %s2794_s6 }
  0xa1   :  { %p2241_p4 = pnand %p2239_p3, %p2236_p2 }
  0xa3   :  { %2244 = shalt.err (!%p2241_p4)
}
  0xa4   :  { %s2245_s18 = scalar_lea.vmem %s2587_s14, 48  ;;  %s2249_s4 = scalar_lea.vmem %s2587_s14, 64 }
  0xa5   :  { %p2246_p5 = scmp.ne.s32.totalorder %s2587_s14, %s2245_s18  ;;  %p2250_p6 = scmp.lt.s32.totalorder %s2587_s14, %s2587_s14 }
  0xa6   :  { %p2251_p7 = scmp.lt.s32.totalorder %s2249_s4, %s2245_s18 }
  0xa8   :  { %p2252_p8 = por %p2251_p7, %p2250_p6 }
  0xaa   :  { %p2253_p9 = pnand %p2252_p8, %p2246_p5 }
  0xac   :  { %2256 = shalt.err (!%p2253_p9)
}
  0xad   :  { %107 = dma.hbm_to_vmem [thread:$0]  %s2794_s6, 48, %s2587_s14, [#allocation12], %s2367_s15, %s2367_s15, %s2368_s16  }
  0xae   :  { %s2375_s11 = smov [#allocation16]   ;;  %s2376_s26 = smov [#allocation19]  }
  0xaf   :  { %s125_s1 = sshll.u32 %s2375_s11, 4  ;;  %s149_s17 = sshll.u32 %s2376_s26, 4  ;;  %s126_s1 = int_to_ptr.vmem [resolvable:$true] %s125_s1  ;;  %s2625_s17 = int_to_ptr.vmem [resolvable:$true] %s149_s17 }
  0xb0   :  { %s2257_s2 = scalar_lea.hbm %s2796_s8, 48 }
  0xb1   :  { %p2258_p10 = scmp.ne.s32.totalorder %s2796_s8, %s2257_s2  ;;  %p2261_p11 = scmp.lt.u32.totalorder %s2257_s2, %s2796_s8 }
  0xb3   :  { %p2263_p12 = pnand %p2261_p11, %p2258_p10 }
  0xb5   :  { %2266 = shalt.err (!%p2263_p12)
}
  0xb6   :  { %s2267_s6 = scalar_lea.vmem %s126_s1, 48  ;;  %s2271_s14 = scalar_lea.vmem %s126_s1, 64 }
  0xb7   :  { %p2268_p13 = scmp.ne.s32.totalorder %s126_s1, %s2267_s6  ;;  %p2272_p0 = scmp.lt.s32.totalorder %s126_s1, %s126_s1 }
  0xb8   :  { %p2273_p1 = scmp.lt.s32.totalorder %s2271_s14, %s2267_s6 }
  0xba   :  { %p2274_p2 = por %p2273_p1, %p2272_p0 }
  0xbc   :  { %p2275_p3 = pnand %p2274_p2, %p2268_p13 }
  0xbe   :  { %2278 = shalt.err (!%p2275_p3)
}
  0xbf   :  { %131 = dma.hbm_to_vmem [thread:$0]  %s2796_s8, 48, %s126_s1, [#allocation15], %s2367_s15, %s2367_s15, %s2368_s16  }
  0xc0   :  { %s2279_s25 = scalar_lea.hbm %s2798_s10, 48 }
  0xc1   :  { %p2280_p4 = scmp.ne.s32.totalorder %s2798_s10, %s2279_s25  ;;  %p2283_p5 = scmp.lt.u32.totalorder %s2279_s25, %s2798_s10 }
  0xc3   :  { %p2285_p6 = pnand %p2283_p5, %p2280_p4 }
  0xc5   :  { %2288 = shalt.err (!%p2285_p6)
}
  0xc6   :  { %s2289_s28 = scalar_lea.vmem %s2625_s17, 48  ;;  %s2293_s8 = scalar_lea.vmem %s2625_s17, 64 }
  0xc7   :  { %p2290_p7 = scmp.ne.s32.totalorder %s2625_s17, %s2289_s28  ;;  %p2294_p8 = scmp.lt.s32.totalorder %s2625_s17, %s2625_s17 }
  0xc8   :  { %p2295_p9 = scmp.lt.s32.totalorder %s2293_s8, %s2289_s28 }
  0xca   :  { %p2296_p10 = por %p2295_p9, %p2294_p8 }
  0xcc   :  { %p2297_p11 = pnand %p2296_p10, %p2290_p7 }
  0xce   :  { %2300 = shalt.err (!%p2297_p11)
}
  0xcf   :  { %155 = dma.hbm_to_vmem [thread:$0]  %s2798_s10, 48, %s2625_s17, [#allocation18], %s2367_s15, %s2367_s15, %s2368_s16  }
  0xd0   :  { %s2377_s26 = smov [#allocation22]   ;;  %s2301_s7 = scalar_lea.hbm %s2800_s12, 16 }
  0xd1   :  { %s174_s19 = sshll.u32 %s2377_s26, 4  ;;  %p2302_p12 = scmp.ne.s32.totalorder %s2800_s12, %s2301_s7  ;;  %s175_s19 = int_to_ptr.vmem [resolvable:$true] %s174_s19 }
  0xd2   :  { %p2305_p13 = scmp.lt.u32.totalorder %s2301_s7, %s2800_s12 }
  0xd4   :  { %p2307_p0 = pnand %p2305_p13, %p2302_p12 }
  0xd6   :  { %2310 = shalt.err (!%p2307_p0)
}
  0xd7   :  { %s2311_s14 = scalar_lea.vmem %s175_s19, 16  ;;  %s2315_s10 = scalar_lea.vmem %s175_s19, 32 }
  0xd8   :  { %p2312_p1 = scmp.ne.s32.totalorder %s175_s19, %s2311_s14  ;;  %p2316_p2 = scmp.lt.s32.totalorder %s175_s19, %s175_s19 }
  0xd9   :  { %p2317_p3 = scmp.lt.s32.totalorder %s2315_s10, %s2311_s14 }
  0xdb   :  { %p2318_p4 = por %p2317_p3, %p2316_p2 }
  0xdd   :  { %p2319_p5 = pnand %p2318_p4, %p2312_p1 }
  0xdf   :  { %2322 = shalt.err (!%p2319_p5)
}
  0xe0   :  { %177 = dma.hbm_to_vmem [thread:$0]  %s2800_s12, 16, %s175_s19, [#allocation21]  }
  0xe1   :  { %2345 = dma.done.wait [#allocation3], 256  }
  0xe2   :  { %2346 = vsyncadd [#allocation3], 4294967040 }
  0xe3   :  { %2347 = dma.done.wait [#allocation6], 528  }
  0xe4   :  { %2348 = vsyncadd [#allocation6], 4294966768 }
  0xe5   :  { %2349 = dma.done.wait [#allocation9], 6192  }
  0xe6   :  { %2350 = vsyncadd [#allocation9], 4294961104 }
  0xe7   :  { %2351 = dma.done.wait [#allocation12], 96  }
  0xe8   :  { %2352 = vsyncadd [#allocation12], 4294967200 }
  0xe9   :  { %2353 = dma.done.wait [#allocation15], 6192  }
  0xea   :  { %2354 = vsyncadd [#allocation15], 4294961104 }
  0xeb   :  { %2355 = dma.done.wait [#allocation18], 96  }
  0xec   :  { %2356 = vsyncadd [#allocation18], 4294967200 }
  0xed   :  { %2357 = dma.done.wait [#allocation21], 2064  }
  0xee   :  { %2358 = vsyncadd [#allocation21], 4294965232  ;;  %vm230_vm0 = vcmask 261120   ;;  %v219_v0 = vld [vmem:[#allocation5] sm:$0xff]  ;;  %v220_v1 = vld [vmem:[#allocation5 + $0x8] sm:$0xff]  ;;  %s2378_s12 = smov [#allocation23]  }
  0xef   :  { %v221_v2 = vld [vmem:[#allocation5 + $0x10] sm:$0xff]  ;;  %v1763_v3 = vpack.c.bf16 %v220_v1, %v219_v0  ;;  %v222_v4 = vld [vmem:[#allocation5 + $0x18] sm:$0xff]  ;;  %v318_v7 = vld [vmem:[#allocation8] sm:$0xff]  ;;  %s1335_s17 = sshll.u32 %s2378_s12, 4  ;;  %vm1327_vm15 = vcmask 130048   ;;  %s1336_s17 = int_to_ptr.vmem [resolvable:$true] %s1335_s17 }
  0xf0   :  { %v217_v5 = vld [vmem:[#allocation2] sm:$0xff]  ;;  %v1767_v6 = vpack.c.bf16 %v222_v4, %v221_v2  ;;  %v321_v11 = vld [vmem:[#allocation8 + $0x18] sm:$0xff]  ;;  %v322_v13 = vld [vmem:[#allocation8 + $0x20] sm:$0xff]  ;;  %s2323_s27 = scalar_lea.vmem %s1336_s17, 256  ;;  %p2328_p7 = scmp.lt.s32.totalorder %s1336_s17, %s1336_s17 }
  0xf1   :  { %1515 = vmatprep.mubr.msk.f32.mxu0 %vm230_vm0, %v217_v5  ;;  %v319_v8 = vld [vmem:[#allocation8 + $0x8] sm:$0xff]  ;;  %v320_v9 = vld [vmem:[#allocation8 + $0x10] sm:$0xff]  ;;  %1764 = vmatprep.subr.bf16.mxu0 %v1763_v3  ;;  %v325_v18 = vld [vmem:[#allocation8 + $0x38] sm:$0xff]  ;;  %p2324_p6 = scmp.ne.s32.totalorder %s1336_s17, %s2323_s27  ;;  %p2329_p8 = scmp.lt.s32.totalorder %s2323_s27, %s2323_s27 }
  0xf2   :  { %v1771_v10 = vpack.c.bf16 %v319_v8, %v318_v7  ;;  %1766 = vmatpush3.bf16.msra.mxu0 %v1763_v3  ;;  %v1775_v12 = vpack.c.bf16 %v321_v11, %v320_v9  ;;  %v323_v14 = vld [vmem:[#allocation8 + $0x28] sm:$0xff]  ;;  %v218_v16 = vld [vmem:[#allocation2 + $0x8] sm:$0xff]  ;;  %v326_v20 = vld [vmem:[#allocation8 + $0x40] sm:$0xff] }
  0xf3   :  { %1768 = vmatprep.subr.bf16.mxu0 %v1767_v6  ;;  %v1779_v15 = vpack.c.bf16 %v323_v14, %v322_v13  ;;  %v324_v17 = vld [vmem:[#allocation8 + $0x30] sm:$0xff]  ;;  %v327_v21 = vld [vmem:[#allocation8 + $0x48] sm:$0xff]  ;;  %v329_v24 = vld [vmem:[#allocation8 + $0x58] sm:$0xff]  ;;  %p2330_p9 = por %p2329_p8, %p2328_p7 }
  0xf4   :  { %1772 = vmatprep.subr.bf16.mxu1 %v1771_v10  ;;  %v1783_v19 = vpack.c.bf16 %v325_v18, %v324_v17  ;;  %v1787_v22 = vpack.c.bf16 %v327_v21, %v326_v20  ;;  %v328_v23 = vld [vmem:[#allocation8 + $0x50] sm:$0xff]  ;;  %v330_v26 = vld [vmem:[#allocation8 + $0x60] sm:$0xff]  ;;  %v331_v27 = vld [vmem:[#allocation8 + $0x68] sm:$0xff] }
  0xf5   :  { %1774 = vmatpush3.bf16.msra.mxu1 %v1771_v10  ;;  %v1791_v25 = vpack.c.bf16 %v329_v24, %v328_v23  ;;  %v1795_v28 = vpack.c.bf16 %v331_v27, %v330_v26  ;;  %v332_v29 = vld [vmem:[#allocation8 + $0x70] sm:$0xff]  ;;  %v333_v30 = vld [vmem:[#allocation8 + $0x78] sm:$0xff]  ;;  %v1356_v44 = vld [vmem:[#allocation10] ss:$0 sm:$0xff]  ;;  %p2331_p10 = pnand %p2330_p9, %p2324_p6 }
  0xf6   :  { %1776 = vmatprep.subr.bf16.mxu1 %v1775_v12  ;;  %1770 = vmatpush3.bf16.msra.mxu0 %v1767_v6  ;;  %v1799_v31 = vpack.c.bf16 %v333_v30, %v332_v29  ;;  %v1353_v32 = vld [vmem:[#allocation7] ss:$0 sm:$0xff]  ;;  %v467_v41 = vld [vmem:[#allocation14] sm:$0xff]  ;;  %v468_v42 = vld [vmem:[#allocation14 + $0x8] sm:$0xff] }
  0xf7   :  { %v1803_v43 = vpack.c.bf16 %v468_v42, %v467_v41  ;;  %v469_v55 = vld [vmem:[#allocation14 + $0x10] sm:$0xff]  ;;  %v470_v56 = vld [vmem:[#allocation14 + $0x18] sm:$0xff]  ;;  %v471_v58 = vld [vmem:[#allocation14 + $0x20] sm:$0xff] }
  0xf8   :  { %v1807_v57 = vpack.c.bf16 %v470_v56, %v469_v55  ;;  %v472_v59 = vld [vmem:[#allocation14 + $0x28] sm:$0xff]  ;;  %v473_v61 = vld [vmem:[#allocation14 + $0x30] sm:$0xff]  ;;  %v474_v62 = vld [vmem:[#allocation14 + $0x38] sm:$0xff] }
  0xf9   :  { %1778 = vmatpush3.bf16.msra.mxu1 %v1775_v12  ;;  %1516 = vmatmul.mubr.msk.f32.vlgmr.msra.gmra.mrb[0].mxu0 %vm230_vm0, %v218_v16  ;;  %v1811_v60 = vpack.c.bf16 %v472_v59, %v471_v58  ;;  %v1815_v63 = vpack.c.bf16 %v474_v62, %v473_v61  ;;  %v475_v0 = vld [vmem:[#allocation14 + $0x40] sm:$0xff]  ;;  %v476_v1 = vld [vmem:[#allocation14 + $0x48] sm:$0xff]  ;;  %v477_v3 = vld [vmem:[#allocation14 + $0x50] sm:$0xff] }
  0xfa   :  { %1780 = vmatprep.subr.bf16.mxu1 %v1779_v15  ;;  %1804 = vmatprep.subr.bf16.mxu0 %v1803_v43  ;;  %v1819_v2 = vpack.c.bf16 %v476_v1, %v475_v0  ;;  %v478_v4 = vld [vmem:[#allocation14 + $0x58] sm:$0xff]  ;;  %v479_v5 = vld [vmem:[#allocation14 + $0x60] sm:$0xff]  ;;  %v480_v7 = vld [vmem:[#allocation14 + $0x68] sm:$0xff] }
  0xfb   :  { %1806 = vmatpush3.bf16.msra.mxu0 %v1803_v43  ;;  %v1823_v6 = vpack.c.bf16 %v478_v4, %v477_v3  ;;  %v1827_v8 = vpack.c.bf16 %v480_v7, %v479_v5  ;;  %v481_v9 = vld [vmem:[#allocation14 + $0x70] sm:$0xff]  ;;  %v482_v10 = vld [vmem:[#allocation14 + $0x78] sm:$0xff]  ;;  %v1359_v43 = vld [vmem:[#allocation16] ss:$0 sm:$0xff] }
  0xfc   :  { %1808 = vmatprep.subr.bf16.mxu0 %v1807_v57  ;;  %v1831_v11 = vpack.c.bf16 %v482_v10, %v481_v9  ;;  %v1358_v30 = vld [vmem:[#allocation13] ss:$0 sm:$0xff]  ;;  %v621_v55 = vld [vmem:[#allocation8 + $0x98] sm:$0xff]  ;;  %v628_v1 = vld [vmem:[#allocation8 + $0xd0] sm:$0xff] }
  0xfd   :  { %1782 = vmatpush3.bf16.msra.mxu1 %v1779_v15  ;;  %v619_v41 = vld [vmem:[#allocation8 + $0x88] sm:$0xff]  ;;  %v625_v61 = vld [vmem:[#allocation8 + $0xb8] sm:$0xff]  ;;  %v630_v5 = vld [vmem:[#allocation8 + $0xe0] sm:$0xff] }
  0xfe   :  { %1784 = vmatprep.subr.bf16.mxu1 %v1783_v19  ;;  %v623_v58 = vld [vmem:[#allocation8 + $0xa8] sm:$0xff]  ;;  %v629_v3 = vld [vmem:[#allocation8 + $0xd8] sm:$0xff] }
  0xff   :  { %1810 = vmatpush3.bf16.msra.mxu0 %v1807_v57  ;;  %v622_v57 = vld [vmem:[#allocation8 + $0xa0] sm:$0xff]  ;;  %v627_v0 = vld [vmem:[#allocation8 + $0xc8] sm:$0xff]  ;;  %v1855_v4 = vpack.c.bf16 %v629_v3, %v628_v1  ;;  %v633_v9 = vld [vmem:[#allocation8 + $0xf8] sm:$0xff] }
 0x100   :  { %1812 = vmatprep.subr.bf16.mxu0 %v1811_v60  ;;  %v1843_v59 = vpack.c.bf16 %v623_v58, %v622_v57  ;;  %v775_v57 = vld [vmem:[#allocation14 + $0xa8] sm:$0xff]  ;;  %v780_v1 = vld [vmem:[#allocation14 + $0xd0] sm:$0xff] }
 0x101   :  { %1786 = vmatpush3.bf16.msra.mxu1 %v1783_v19 }
 0x102   :  { %1788 = vmatprep.subr.bf16.mxu1 %v1787_v22 }
 0x103   :  { %1814 = vmatpush3.bf16.msra.mxu0 %v1811_v60  ;;  %v624_v60 = vld [vmem:[#allocation8 + $0xb0] sm:$0xff] }
 0x104   :  { %1816 = vmatprep.subr.bf16.mxu0 %v1815_v63  ;;  %v1847_v62 = vpack.c.bf16 %v625_v61, %v624_v60  ;;  %v777_v60 = vld [vmem:[#allocation14 + $0xb8] sm:$0xff] }
 0x105   :  { %1790 = vmatpush3.bf16.msra.mxu1 %v1787_v22 }
 0x106   :  { %1792 = vmatprep.subr.bf16.mxu1 %v1791_v25 }
 0x107   :  { %1818 = vmatpush3.bf16.msra.mxu0 %v1815_v63  ;;  %v626_v63 = vld [vmem:[#allocation8 + $0xc0] sm:$0xff] }
 0x108   :  { %1820 = vmatprep.subr.bf16.mxu0 %v1819_v2 }
 0x109   :  { %1794 = vmatpush3.bf16.msra.mxu1 %v1791_v25 }
 0x10a   :  { %1796 = vmatprep.subr.bf16.mxu1 %v1795_v28 }
 0x10b   :  { %1822 = vmatpush3.bf16.msra.mxu0 %v1819_v2  ;;  %v1851_v2 = vpack.c.bf16 %v627_v0, %v626_v63  ;;  %v779_v63 = vld [vmem:[#allocation14 + $0xc8] sm:$0xff] }
 0x10c   :  { %1824 = vmatprep.subr.bf16.mxu0 %v1823_v6 }
 0x10d   :  { %1798 = vmatpush3.bf16.msra.mxu1 %v1795_v28  ;;  %v1357_v28 = vld [vmem:[#allocation11] ss:$0 sm:$0xff] }
 0x10e   :  { %1800 = vmatprep.subr.bf16.mxu1 %v1799_v31 }
 0x10f   :  { %1826 = vmatpush3.bf16.msra.mxu0 %v1823_v6  ;;  %v631_v6 = vld [vmem:[#allocation8 + $0xe8] sm:$0xff] }
 0x110   :  { %1828 = vmatprep.subr.bf16.mxu0 %v1827_v8  ;;  %v1859_v7 = vpack.c.bf16 %v631_v6, %v630_v5  ;;  %v783_v5 = vld [vmem:[#allocation14 + $0xe8] sm:$0xff] }
 0x111   :  { %1802 = vmatpush3.bf16.msra.mxu1 %v1799_v31 }
 0x113   :  { %1830 = vmatpush3.bf16.msra.mxu0 %v1827_v8  ;;  %v632_v8 = vld [vmem:[#allocation8 + $0xf0] sm:$0xff] }
 0x114   :  { %1832 = vmatprep.subr.bf16.mxu0 %v1831_v11  ;;  %v1863_v10 = vpack.c.bf16 %v633_v9, %v632_v8  ;;  %v785_v8 = vld [vmem:[#allocation14 + $0xf8] sm:$0xff] }
 0x117   :  { %1834 = vmatpush3.bf16.msra.mxu0 %v1831_v11 }
 0x1cc   :  { %v1517_v33 = vpop.f32.mrb[0].mxu0 }
 0x1cd   :  { %v309_v34 = vadd.f32 %v1517_v33, %v1353_v32  ;;  %v303_v35 = vpop.f32.mrb[1].mxu0 }
 0x1ce   :  { %v304_v36 = vadd.f32 %v1353_v32, %v303_v35 }
 0x1cf   :  { %v315_v37 = vmul.f32 0.01, %v309_v34  ;;  %vm313_vm2 = vcmp.ge.f32.partialorder %v309_v34, 0.0 }
 0x1d0   :  { %vm312_vm1 = vcmp.ge.f32.partialorder %v304_v36, 0.0  ;;  %v314_v38 = vmul.f32 0.01, %v304_v36 }
 0x1d1   :  { %v2680_v40 = vsel %vm313_vm2, %v309_v34, %v315_v37 }
 0x1d2   :  { %v2677_v39 = vsel %vm312_vm1, %v304_v36, %v314_v38  ;;  %v618_v38 = vld [vmem:[#allocation8 + $0x80] sm:$0xff] }
 0x1d3   :  { %1550 = vmatprep.mubr.f32.mxu1 %v2677_v39  ;;  %v1835_v42 = vpack.c.bf16 %v619_v41, %v618_v38  ;;  %v770_v41 = vld [vmem:[#allocation14 + $0x80] sm:$0xff] }
 0x1d4   :  { %1551 = vmatmul.mubr.f32.vlgmr.msra.gmra.mrb[0].mxu1 %v2680_v40 }
 0x1d5   :  { %1836 = vmatprep.subr.bf16.mxu1 %v1835_v42 }
 0x1d6   :  { %1838 = vmatpush3.bf16.msra.mxu1 %v1835_v42  ;;  %v771_v42 = vld [vmem:[#allocation14 + $0x88] sm:$0xff] }
 0x2a7   :  { %v1552_v45 = vpop.f32.mrb[0].mxu1 }
 0x2a8   :  { %v413_v46 = vadd.f32 %v1552_v45, %v1356_v44  ;;  %v407_v47 = vpop.f32.mrb[1].mxu1 }
 0x2a9   :  { %v408_v48 = vadd.f32 %v1356_v44, %v407_v47 }
 0x2aa   :  { %v419_v49 = vmul.f32 0.01, %v413_v46  ;;  %vm417_vm4 = vcmp.ge.f32.partialorder %v413_v46, 0.0 }
 0x2ab   :  { %v418_v50 = vmul.f32 0.01, %v408_v48  ;;  %vm416_vm3 = vcmp.ge.f32.partialorder %v408_v48, 0.0 }
 0x2ac   :  { %v2688_v53 = vsel %vm417_vm4, %v413_v46, %v419_v49 }
 0x2ad   :  { %v2683_v51 = vsel %vm416_vm3, %v408_v48, %v418_v50  ;;  %v432_v54 = vmul.f32 %v2688_v53, %v2688_v53 }
 0x2ae   :  { %424 = vadd.xlane.f32.xlu0 %v2683_v51  ;;  %v431_v52 = vmul.f32 %v2683_v51, %v2683_v51 }
 0x2b0   :  { %433 = vadd.xlane.f32.xlu1 %v431_v52 }
 0x2b2   :  { %426 = vadd.xlane.f32.xlu0 %v2688_v53 }
 0x2b4   :  { %435 = vadd.xlane.f32.xlu1 %v432_v54  ;;  %v620_v54 = vld [vmem:[#allocation8 + $0x90] sm:$0xff] }
 0x2b5   :  { %v1839_v56 = vpack.c.bf16 %v621_v55, %v620_v54  ;;  %v773_v54 = vld [vmem:[#allocation14 + $0x98] sm:$0xff] }
 0x2b7   :  { %1840 = vmatprep.subr.bf16.mxu1 %v1839_v56 }
 0x2b8   :  { %1842 = vmatpush3.bf16.msra.mxu1 %v1839_v56  ;;  %v774_v56 = vld [vmem:[#allocation14 + $0xa0] sm:$0xff] }
 0x2b9   :  { %1844 = vmatprep.subr.bf16.mxu1 %v1843_v59  ;;  %v1875_v58 = vpack.c.bf16 %v775_v57, %v774_v56  ;;  %v929_v56 = vld [vmem:[#allocation8 + $0x128] sm:$0xff] }
 0x2bc   :  { %1846 = vmatpush3.bf16.msra.mxu1 %v1843_v59  ;;  %v776_v59 = vld [vmem:[#allocation14 + $0xb0] sm:$0xff] }
 0x2bd   :  { %1848 = vmatprep.subr.bf16.mxu1 %v1847_v62  ;;  %v1879_v61 = vpack.c.bf16 %v777_v60, %v776_v59  ;;  %v931_v59 = vld [vmem:[#allocation8 + $0x138] sm:$0xff] }
 0x2c0   :  { %1850 = vmatpush3.bf16.msra.mxu1 %v1847_v62  ;;  %v778_v62 = vld [vmem:[#allocation14 + $0xc0] sm:$0xff] }
 0x2c1   :  { %1852 = vmatprep.subr.bf16.mxu1 %v1851_v2  ;;  %v1883_v0 = vpack.c.bf16 %v779_v63, %v778_v62  ;;  %v933_v62 = vld [vmem:[#allocation8 + $0x148] sm:$0xff]  ;;  %v934_v63 = vld [vmem:[#allocation8 + $0x150] sm:$0xff] }
 0x2c4   :  { %1854 = vmatpush3.bf16.msra.mxu1 %v1851_v2  ;;  %v781_v2 = vld [vmem:[#allocation14 + $0xd8] sm:$0xff] }
 0x2c5   :  { %1856 = vmatprep.subr.bf16.mxu1 %v1855_v4  ;;  %v1887_v3 = vpack.c.bf16 %v781_v2, %v780_v1  ;;  %v935_v1 = vld [vmem:[#allocation8 + $0x158] sm:$0xff] }
 0x2c6   :  { %v1919_v2 = vpack.c.bf16 %v935_v1, %v934_v63  ;;  %v1086_v63 = vld [vmem:[#allocation14 + $0x150] sm:$0xff] }
 0x2c8   :  { %1858 = vmatpush3.bf16.msra.mxu1 %v1855_v4  ;;  %v782_v4 = vld [vmem:[#allocation14 + $0xe0] sm:$0xff] }
 0x2c9   :  { %1860 = vmatprep.subr.bf16.mxu1 %v1859_v7  ;;  %v1891_v6 = vpack.c.bf16 %v783_v5, %v782_v4  ;;  %v937_v4 = vld [vmem:[#allocation8 + $0x168] sm:$0xff] }
 0x2cc   :  { %1862 = vmatpush3.bf16.msra.mxu1 %v1859_v7  ;;  %v784_v7 = vld [vmem:[#allocation14 + $0xf0] sm:$0xff] }
 0x2cd   :  { %1864 = vmatprep.subr.bf16.mxu1 %v1863_v10  ;;  %v1895_v9 = vpack.c.bf16 %v785_v8, %v784_v7  ;;  %v939_v7 = vld [vmem:[#allocation8 + $0x178] sm:$0xff] }
 0x2d0   :  { %1866 = vmatpush3.bf16.msra.mxu1 %v1863_v10 }
 0x33b   :  { %v425_v12 = vpop.xlane.xlu0 %424 }
 0x33c   :  { %v429_v13 = vmul.f32 0.0078125, %v425_v12 }
 0x33d   :  { %v434_v14 = vpop.xlane.xlu1 %433 }
 0x33e   :  { %v439_v15 = vmul.f32 %v429_v13, %v429_v13  ;;  %v437_v16 = vmul.f32 0.0078125, %v434_v14  ;;  %v443_v26 = vsub.f32 %v2683_v51, %v429_v13 }
 0x33f   :  { %v427_v17 = vpop.xlane.xlu0 %426 }
 0x340   :  { %v441_v18 = vsub.f32 %v437_v16, %v439_v15  ;;  %v430_v19 = vmul.f32 0.0078125, %v427_v17 }
 0x341   :  { %v436_v20 = vpop.xlane.xlu1 %435 }
 0x342   :  { %v445_v21 = vadd.f32 1e-05, %v441_v18  ;;  %v440_v22 = vmul.f32 %v430_v19, %v430_v19  ;;  %v438_v23 = vmul.f32 0.0078125, %v436_v20  ;;  %v444_v31 = vsub.f32 %v2688_v53, %v430_v19 }
 0x344   :  { %2013 = vrsqrt.f32 %v445_v21  ;;  %v442_v24 = vsub.f32 %v438_v23, %v440_v22 }
 0x346   :  { %v446_v25 = vadd.f32 1e-05, %v442_v24 }
 0x348   :  { %2015 = vrsqrt.f32 %v446_v25 }
 0x34e   :  { %v2014_v27 = vpop.eup %2013 }
 0x34f   :  { %v449_v29 = vmul.f32 %v2014_v27, %v443_v26 }
 0x351   :  { %v457_v32 = vmul.f32 %v1357_v28, %v449_v29 }
 0x352   :  { %v2016_v33 = vpop.eup %2015 }
 0x353   :  { %v450_v34 = vmul.f32 %v2016_v33, %v444_v31  ;;  %v465_v35 = vadd.f32 %v1358_v30, %v457_v32  ;;  %v1361_v31 = vld [vmem:[#allocation19] ss:$0 sm:$0xff] }
 0x355   :  { %v458_v36 = vmul.f32 %v1357_v28, %v450_v34  ;;  %1585 = vmatprep.mubr.f32.mxu0 %v465_v35  ;;  %v1360_v28 = vld [vmem:[#allocation17] ss:$0 sm:$0xff] }
 0x357   :  { %v466_v37 = vadd.f32 %v1358_v30, %v458_v36 }
 0x359   :  { %1586 = vmatmul.mubr.f32.vlgmr.msra.gmra.mrb[2].mxu0 %v466_v37 }
 0x42c   :  { %v1587_v44 = vpop.f32.mrb[2].mxu0 }
 0x42d   :  { %v562_v45 = vadd.f32 %v1587_v44, %v1359_v43  ;;  %v556_v46 = vpop.f32.mrb[3].mxu0  ;;  %v1362_v44 = vld [vmem:[#allocation10 + $0x1] ss:$0 sm:$0xff] }
 0x42e   :  { %v557_v47 = vadd.f32 %v1359_v43, %v556_v46  ;;  %v1867_v43 = vpack.c.bf16 %v771_v42, %v770_v41  ;;  %v925_v41 = vld [vmem:[#allocation8 + $0x108] sm:$0xff] }
 0x42f   :  { %v568_v48 = vmul.f32 0.01, %v562_v45  ;;  %vm566_vm5 = vcmp.ge.f32.partialorder %v562_v45, 0.0 }
 0x430   :  { %v567_v49 = vmul.f32 0.01, %v557_v47  ;;  %vm565_vm6 = vcmp.ge.f32.partialorder %v557_v47, 0.0  ;;  %1868 = vmatprep.subr.bf16.mxu0 %v1867_v43 }
 0x431   :  { %v2695_v50 = vsel %vm566_vm5, %v562_v45, %v568_v48  ;;  %1870 = vmatpush3.bf16.msra.mxu0 %v1867_v43  ;;  %v1365_v43 = vld [vmem:[#allocation16 + $0x1] ss:$0 sm:$0xff] }
 0x432   :  { %575 = vadd.xlane.f32.xlu1 %v2695_v50  ;;  %v2698_v51 = vsel %vm565_vm6, %v557_v47, %v567_v49  ;;  %v580_v52 = vmul.f32 %v2695_v50, %v2695_v50 }
 0x433   :  { %573 = vadd.xlane.f32.xlu0 %v2698_v51  ;;  %v579_v53 = vmul.f32 %v2698_v51, %v2698_v51 }
 0x436   :  { %583 = vadd.xlane.f32.xlu1 %v580_v52 }
 0x437   :  { %581 = vadd.xlane.f32.xlu0 %v579_v53  ;;  %v772_v53 = vld [vmem:[#allocation14 + $0x90] sm:$0xff] }
 0x438   :  { %v1871_v55 = vpack.c.bf16 %v773_v54, %v772_v53  ;;  %v927_v53 = vld [vmem:[#allocation8 + $0x118] sm:$0xff] }
 0x43a   :  { %1872 = vmatprep.subr.bf16.mxu0 %v1871_v55 }
 0x43b   :  { %1874 = vmatpush3.bf16.msra.mxu0 %v1871_v55  ;;  %v928_v55 = vld [vmem:[#allocation8 + $0x120] sm:$0xff] }
 0x43c   :  { %1876 = vmatprep.subr.bf16.mxu0 %v1875_v58  ;;  %v1907_v57 = vpack.c.bf16 %v929_v56, %v928_v55  ;;  %v1081_v55 = vld [vmem:[#allocation14 + $0x128] sm:$0xff] }
 0x43f   :  { %1878 = vmatpush3.bf16.msra.mxu0 %v1875_v58  ;;  %v930_v58 = vld [vmem:[#allocation8 + $0x130] sm:$0xff] }
 0x440   :  { %1880 = vmatprep.subr.bf16.mxu0 %v1879_v61  ;;  %v1911_v60 = vpack.c.bf16 %v931_v59, %v930_v58  ;;  %v1083_v58 = vld [vmem:[#allocation14 + $0x138] sm:$0xff] }
 0x443   :  { %1882 = vmatpush3.bf16.msra.mxu0 %v1879_v61  ;;  %v932_v61 = vld [vmem:[#allocation8 + $0x140] sm:$0xff] }
 0x444   :  { %1884 = vmatprep.subr.bf16.mxu0 %v1883_v0 }
 0x447   :  { %1886 = vmatpush3.bf16.msra.mxu0 %v1883_v0  ;;  %v1915_v0 = vpack.c.bf16 %v933_v62, %v932_v61  ;;  %v1085_v61 = vld [vmem:[#allocation14 + $0x148] sm:$0xff] }
 0x448   :  { %1888 = vmatprep.subr.bf16.mxu0 %v1887_v3 }
 0x44b   :  { %1890 = vmatpush3.bf16.msra.mxu0 %v1887_v3  ;;  %v936_v3 = vld [vmem:[#allocation8 + $0x160] sm:$0xff] }
 0x44c   :  { %1892 = vmatprep.subr.bf16.mxu0 %v1891_v6  ;;  %v1923_v5 = vpack.c.bf16 %v937_v4, %v936_v3  ;;  %v1089_v3 = vld [vmem:[#allocation14 + $0x168] sm:$0xff] }
 0x44f   :  { %1894 = vmatpush3.bf16.msra.mxu0 %v1891_v6  ;;  %v938_v6 = vld [vmem:[#allocation8 + $0x170] sm:$0xff] }
 0x450   :  { %1896 = vmatprep.subr.bf16.mxu0 %v1895_v9  ;;  %v1927_v8 = vpack.c.bf16 %v939_v7, %v938_v6  ;;  %v1091_v6 = vld [vmem:[#allocation14 + $0x178] sm:$0xff] }
 0x453   :  { %1898 = vmatpush3.bf16.msra.mxu0 %v1895_v9 }
 0x4bf   :  { %v576_v11 = vpop.xlane.xlu1 %575 }
 0x4c0   :  { %v578_v12 = vmul.f32 0.0078125, %v576_v11  ;;  %v574_v13 = vpop.xlane.xlu0 %573 }
 0x4c1   :  { %v577_v14 = vmul.f32 0.0078125, %v574_v13 }
 0x4c2   :  { %v588_v16 = vmul.f32 %v578_v12, %v578_v12  ;;  %v592_v25 = vsub.f32 %v2695_v50, %v578_v12 }
 0x4c3   :  { %v584_v15 = vpop.xlane.xlu1 %583  ;;  %v587_v19 = vmul.f32 %v577_v14, %v577_v14  ;;  %v591_v27 = vsub.f32 %v2698_v51, %v577_v14 }
 0x4c4   :  { %v586_v17 = vmul.f32 0.0078125, %v584_v15  ;;  %v582_v18 = vpop.xlane.xlu0 %581 }
 0x4c5   :  { %v585_v20 = vmul.f32 0.0078125, %v582_v18 }
 0x4c6   :  { %v590_v21 = vsub.f32 %v586_v17, %v588_v16 }
 0x4c7   :  { %v589_v22 = vsub.f32 %v585_v20, %v587_v19 }
 0x4c8   :  { %v594_v23 = vadd.f32 1e-05, %v590_v21 }
 0x4c9   :  { %v593_v24 = vadd.f32 1e-05, %v589_v22 }
 0x4ca   :  { %2017 = vrsqrt.f32 %v594_v23 }
 0x4cb   :  { %2019 = vrsqrt.f32 %v593_v24 }
 0x4d4   :  { %v2018_v26 = vpop.eup %2017 }
 0x4d5   :  { %v2020_v29 = vpop.eup %2019  ;;  %v598_v30 = vmul.f32 %v2018_v26, %v592_v25 }
 0x4d6   :  { %v597_v32 = vmul.f32 %v2020_v29, %v591_v27  ;;  %v1363_v27 = vld [vmem:[#allocation11 + $0x1] ss:$0 sm:$0xff] }
 0x4d7   :  { %v606_v33 = vmul.f32 %v1360_v28, %v598_v30 }
 0x4d8   :  { %v605_v34 = vmul.f32 %v1360_v28, %v597_v32 }
 0x4d9   :  { %v614_v35 = vadd.f32 %v1361_v31, %v606_v33 }
 0x4da   :  { %v613_v36 = vadd.f32 %v1361_v31, %v605_v34  ;;  %v1364_v31 = vld [vmem:[#allocation13 + $0x1] ss:$0 sm:$0xff] }
 0x4db   :  { %v2711_v38 = vadd.f32 %v614_v35, %v2680_v40 }
 0x4dc   :  { %v2708_v37 = vadd.f32 %v613_v36, %v2677_v39  ;;  %v924_v36 = vld [vmem:[#allocation8 + $0x100] sm:$0xff] }
 0x4dd   :  { %v1899_v42 = vpack.c.bf16 %v925_v41, %v924_v36  ;;  %v1076_v41 = vld [vmem:[#allocation14 + $0x100] sm:$0xff] }
 0x4de   :  { %1620 = vmatprep.mubr.f32.mxu1 %v2708_v37 }
 0x4df   :  { %1621 = vmatmul.mubr.f32.vlgmr.msra.gmra.mrb[2].mxu1 %v2711_v38  ;;  %1900 = vmatprep.subr.bf16.mxu1 %v1899_v42 }
 0x4e0   :  { %1902 = vmatpush3.bf16.msra.mxu1 %v1899_v42  ;;  %v1077_v42 = vld [vmem:[#allocation14 + $0x108] sm:$0xff] }
 0x5b2   :  { %v1622_v45 = vpop.f32.mrb[2].mxu1 }
 0x5b3   :  { %v714_v46 = vadd.f32 %v1622_v45, %v1362_v44  ;;  %v708_v47 = vpop.f32.mrb[3].mxu1 }
 0x5b4   :  { %v709_v48 = vadd.f32 %v1362_v44, %v708_v47 }
 0x5b5   :  { %v720_v49 = vmul.f32 0.01, %v714_v46  ;;  %vm718_vm7 = vcmp.ge.f32.partialorder %v714_v46, 0.0 }
 0x5b6   :  { %v719_v39 = vmul.f32 0.01, %v709_v48  ;;  %vm717_vm8 = vcmp.ge.f32.partialorder %v709_v48, 0.0 }
 0x5b7   :  { %v2715_v40 = vsel %vm718_vm7, %v714_v46, %v720_v49 }
 0x5b8   :  { %729 = vadd.xlane.f32.xlu1 %v2715_v40  ;;  %v2718_v50 = vsel %vm717_vm8, %v709_v48, %v719_v39  ;;  %v734_v51 = vmul.f32 %v2715_v40, %v2715_v40 }
 0x5b9   :  { %727 = vadd.xlane.f32.xlu0 %v2718_v50  ;;  %v733_v52 = vmul.f32 %v2718_v50, %v2718_v50 }
 0x5bc   :  { %737 = vadd.xlane.f32.xlu1 %v734_v51 }
 0x5bd   :  { %735 = vadd.xlane.f32.xlu0 %v733_v52  ;;  %v926_v52 = vld [vmem:[#allocation8 + $0x110] sm:$0xff] }
 0x5be   :  { %v1903_v54 = vpack.c.bf16 %v927_v53, %v926_v52  ;;  %v1079_v52 = vld [vmem:[#allocation14 + $0x118] sm:$0xff] }
 0x5c0   :  { %1904 = vmatprep.subr.bf16.mxu1 %v1903_v54 }
 0x5c1   :  { %1906 = vmatpush3.bf16.msra.mxu1 %v1903_v54  ;;  %v1080_v54 = vld [vmem:[#allocation14 + $0x120] sm:$0xff] }
 0x5c2   :  { %1908 = vmatprep.subr.bf16.mxu1 %v1907_v57  ;;  %v1939_v56 = vpack.c.bf16 %v1081_v55, %v1080_v54  ;;  %v1234_v54 = vld [vmem:[#allocation20 + $0x28] sm:$0xff] }
 0x5c5   :  { %1910 = vmatpush3.bf16.msra.mxu1 %v1907_v57  ;;  %v1082_v57 = vld [vmem:[#allocation14 + $0x130] sm:$0xff] }
 0x5c6   :  { %1912 = vmatprep.subr.bf16.mxu1 %v1911_v60  ;;  %v1943_v59 = vpack.c.bf16 %v1083_v58, %v1082_v57  ;;  %v1236_v57 = vld [vmem:[#allocation20 + $0x38] sm:$0xff] }
 0x5c9   :  { %1914 = vmatpush3.bf16.msra.mxu1 %v1911_v60  ;;  %v1084_v60 = vld [vmem:[#allocation14 + $0x140] sm:$0xff] }
 0x5ca   :  { %1916 = vmatprep.subr.bf16.mxu1 %v1915_v0  ;;  %v1947_v62 = vpack.c.bf16 %v1085_v61, %v1084_v60  ;;  %v1238_v60 = vld [vmem:[#allocation20 + $0x48] sm:$0xff]  ;;  %v1239_v61 = vld [vmem:[#allocation20 + $0x50] sm:$0xff] }
 0x5cd   :  { %1918 = vmatpush3.bf16.msra.mxu1 %v1915_v0  ;;  %v1087_v0 = vld [vmem:[#allocation14 + $0x158] sm:$0xff] }
 0x5ce   :  { %1920 = vmatprep.subr.bf16.mxu1 %v1919_v2  ;;  %v1951_v1 = vpack.c.bf16 %v1087_v0, %v1086_v63  ;;  %v1240_v63 = vld [vmem:[#allocation20 + $0x58] sm:$0xff] }
 0x5cf   :  { %v1983_v0 = vpack.c.bf16 %v1240_v63, %v1239_v61 }
 0x5d1   :  { %1922 = vmatpush3.bf16.msra.mxu1 %v1919_v2  ;;  %v1088_v2 = vld [vmem:[#allocation14 + $0x160] sm:$0xff] }
 0x5d2   :  { %1924 = vmatprep.subr.bf16.mxu1 %v1923_v5  ;;  %v1955_v4 = vpack.c.bf16 %v1089_v3, %v1088_v2  ;;  %v1242_v2 = vld [vmem:[#allocation20 + $0x68] sm:$0xff] }
 0x5d5   :  { %1926 = vmatpush3.bf16.msra.mxu1 %v1923_v5  ;;  %v1090_v5 = vld [vmem:[#allocation14 + $0x170] sm:$0xff] }
 0x5d6   :  { %1928 = vmatprep.subr.bf16.mxu1 %v1927_v8  ;;  %v1959_v7 = vpack.c.bf16 %v1091_v6, %v1090_v5  ;;  %v1244_v5 = vld [vmem:[#allocation20 + $0x78] sm:$0xff] }
 0x5d9   :  { %1930 = vmatpush3.bf16.msra.mxu1 %v1927_v8 }
 0x645   :  { %v730_v10 = vpop.xlane.xlu1 %729 }
 0x646   :  { %v732_v11 = vmul.f32 0.0078125, %v730_v10  ;;  %v728_v12 = vpop.xlane.xlu0 %727 }
 0x647   :  { %v731_v13 = vmul.f32 0.0078125, %v728_v12 }
 0x648   :  { %v742_v15 = vmul.f32 %v732_v11, %v732_v11  ;;  %v746_v24 = vsub.f32 %v2715_v40, %v732_v11 }
 0x649   :  { %v738_v14 = vpop.xlane.xlu1 %737  ;;  %v741_v18 = vmul.f32 %v731_v13, %v731_v13  ;;  %v745_v26 = vsub.f32 %v2718_v50, %v731_v13 }
 0x64a   :  { %v740_v16 = vmul.f32 0.0078125, %v738_v14  ;;  %v736_v17 = vpop.xlane.xlu0 %735 }
 0x64b   :  { %v739_v19 = vmul.f32 0.0078125, %v736_v17 }
 0x64c   :  { %v744_v20 = vsub.f32 %v740_v16, %v742_v15 }
 0x64d   :  { %v743_v21 = vsub.f32 %v739_v19, %v741_v18 }
 0x64e   :  { %v748_v22 = vadd.f32 1e-05, %v744_v20 }
 0x64f   :  { %v747_v23 = vadd.f32 1e-05, %v743_v21 }
 0x650   :  { %2021 = vrsqrt.f32 %v748_v22 }
 0x651   :  { %2023 = vrsqrt.f32 %v747_v23 }
 0x65a   :  { %v2022_v25 = vpop.eup %2021 }
 0x65b   :  { %v2024_v28 = vpop.eup %2023  ;;  %v752_v29 = vmul.f32 %v2022_v25, %v746_v24 }
 0x65c   :  { %v751_v30 = vmul.f32 %v2024_v28, %v745_v26  ;;  %v1366_v26 = vld [vmem:[#allocation17 + $0x1] ss:$0 sm:$0xff] }
 0x65d   :  { %v760_v32 = vmul.f32 %v1363_v27, %v752_v29  ;;  %v1367_v29 = vld [vmem:[#allocation19 + $0x1] ss:$0 sm:$0xff] }
 0x65e   :  { %v759_v33 = vmul.f32 %v1363_v27, %v751_v30 }
 0x65f   :  { %v768_v35 = vadd.f32 %v1364_v31, %v760_v32 }
 0x660   :  { %v767_v34 = vadd.f32 %v1364_v31, %v759_v33 }
 0x662   :  { %1655 = vmatprep.mubr.f32.mxu0 %v767_v34 }
 0x663   :  { %1656 = vmatmul.mubr.f32.vlgmr.msra.gmra.mrb[4].mxu0 %v768_v35 }
 0x736   :  { %v1657_v44 = vpop.f32.mrb[4].mxu0 }
 0x737   :  { %v866_v45 = vadd.f32 %v1657_v44, %v1365_v43  ;;  %v860_v46 = vpop.f32.mrb[5].mxu0  ;;  %v1368_v44 = vld [vmem:[#allocation10 + $0x2] ss:$0 sm:$0xff] }
 0x738   :  { %v861_v47 = vadd.f32 %v1365_v43, %v860_v46  ;;  %v1931_v43 = vpack.c.bf16 %v1077_v42, %v1076_v41  ;;  %v1230_v41 = vld [vmem:[#allocation20 + $0x8] sm:$0xff] }
 0x739   :  { %v872_v48 = vmul.f32 0.01, %v866_v45  ;;  %vm870_vm9 = vcmp.ge.f32.partialorder %v866_v45, 0.0 }
 0x73a   :  { %v871_v49 = vmul.f32 0.01, %v861_v47  ;;  %vm869_vm10 = vcmp.ge.f32.partialorder %v861_v47, 0.0  ;;  %1932 = vmatprep.subr.bf16.mxu0 %v1931_v43 }
 0x73b   :  { %v2727_v39 = vsel %vm870_vm9, %v866_v45, %v872_v48  ;;  %1934 = vmatpush3.bf16.msra.mxu0 %v1931_v43  ;;  %v1371_v43 = vld [vmem:[#allocation16 + $0x2] ss:$0 sm:$0xff] }
 0x73c   :  { %881 = vadd.xlane.f32.xlu1 %v2727_v39  ;;  %v2730_v40 = vsel %vm869_vm10, %v861_v47, %v871_v49  ;;  %v886_v50 = vmul.f32 %v2727_v39, %v2727_v39 }
 0x73d   :  { %879 = vadd.xlane.f32.xlu0 %v2730_v40  ;;  %v885_v51 = vmul.f32 %v2730_v40, %v2730_v40 }
 0x740   :  { %889 = vadd.xlane.f32.xlu1 %v886_v50 }
 0x741   :  { %887 = vadd.xlane.f32.xlu0 %v885_v51  ;;  %v1078_v51 = vld [vmem:[#allocation14 + $0x110] sm:$0xff] }
 0x742   :  { %v1935_v53 = vpack.c.bf16 %v1079_v52, %v1078_v51  ;;  %v1232_v51 = vld [vmem:[#allocation20 + $0x18] sm:$0xff] }
 0x744   :  { %1936 = vmatprep.subr.bf16.mxu0 %v1935_v53 }
 0x745   :  { %1938 = vmatpush3.bf16.msra.mxu0 %v1935_v53  ;;  %v1233_v53 = vld [vmem:[#allocation20 + $0x20] sm:$0xff] }
 0x746   :  { %1940 = vmatprep.subr.bf16.mxu0 %v1939_v56  ;;  %v1971_v55 = vpack.c.bf16 %v1234_v54, %v1233_v53 }
 0x749   :  { %1942 = vmatpush3.bf16.msra.mxu0 %v1939_v56  ;;  %v1235_v56 = vld [vmem:[#allocation20 + $0x30] sm:$0xff] }
 0x74a   :  { %1944 = vmatprep.subr.bf16.mxu0 %v1943_v59  ;;  %v1975_v58 = vpack.c.bf16 %v1236_v57, %v1235_v56 }
 0x74d   :  { %1946 = vmatpush3.bf16.msra.mxu0 %v1943_v59  ;;  %v1237_v59 = vld [vmem:[#allocation20 + $0x40] sm:$0xff] }
 0x74e   :  { %1948 = vmatprep.subr.bf16.mxu0 %v1947_v62 }
 0x751   :  { %1950 = vmatpush3.bf16.msra.mxu0 %v1947_v62  ;;  %v1979_v62 = vpack.c.bf16 %v1238_v60, %v1237_v59 }
 0x752   :  { %1952 = vmatprep.subr.bf16.mxu0 %v1951_v1 }
 0x755   :  { %1954 = vmatpush3.bf16.msra.mxu0 %v1951_v1  ;;  %v1241_v1 = vld [vmem:[#allocation20 + $0x60] sm:$0xff] }
 0x756   :  { %1956 = vmatprep.subr.bf16.mxu0 %v1955_v4  ;;  %v1987_v3 = vpack.c.bf16 %v1242_v2, %v1241_v1 }
 0x759   :  { %1958 = vmatpush3.bf16.msra.mxu0 %v1955_v4  ;;  %v1243_v4 = vld [vmem:[#allocation20 + $0x70] sm:$0xff] }
 0x75a   :  { %1960 = vmatprep.subr.bf16.mxu0 %v1959_v7  ;;  %v1991_v6 = vpack.c.bf16 %v1244_v5, %v1243_v4 }
 0x75d   :  { %1962 = vmatpush3.bf16.msra.mxu0 %v1959_v7 }
 0x7c9   :  { %v882_v9 = vpop.xlane.xlu1 %881 }
 0x7ca   :  { %v884_v10 = vmul.f32 0.0078125, %v882_v9  ;;  %v880_v11 = vpop.xlane.xlu0 %879 }
 0x7cb   :  { %v883_v12 = vmul.f32 0.0078125, %v880_v11 }
 0x7cc   :  { %v894_v14 = vmul.f32 %v884_v10, %v884_v10  ;;  %v898_v23 = vsub.f32 %v2727_v39, %v884_v10 }
 0x7cd   :  { %v890_v13 = vpop.xlane.xlu1 %889  ;;  %v893_v17 = vmul.f32 %v883_v12, %v883_v12  ;;  %v897_v25 = vsub.f32 %v2730_v40, %v883_v12 }
 0x7ce   :  { %v892_v15 = vmul.f32 0.0078125, %v890_v13  ;;  %v888_v16 = vpop.xlane.xlu0 %887 }
 0x7cf   :  { %v891_v18 = vmul.f32 0.0078125, %v888_v16 }
 0x7d0   :  { %v896_v19 = vsub.f32 %v892_v15, %v894_v14 }
 0x7d1   :  { %v895_v20 = vsub.f32 %v891_v18, %v893_v17 }
 0x7d2   :  { %v900_v21 = vadd.f32 1e-05, %v896_v19 }
 0x7d3   :  { %v899_v22 = vadd.f32 1e-05, %v895_v20 }
 0x7d4   :  { %2025 = vrsqrt.f32 %v900_v21 }
 0x7d5   :  { %2027 = vrsqrt.f32 %v899_v22 }
 0x7de   :  { %v2026_v24 = vpop.eup %2025 }
 0x7df   :  { %v2028_v27 = vpop.eup %2027  ;;  %v904_v28 = vmul.f32 %v2026_v24, %v898_v23 }
 0x7e0   :  { %v903_v30 = vmul.f32 %v2028_v27, %v897_v25  ;;  %v1369_v25 = vld [vmem:[#allocation11 + $0x2] ss:$0 sm:$0xff] }
 0x7e1   :  { %v912_v31 = vmul.f32 %v1366_v26, %v904_v28 }
 0x7e2   :  { %v911_v32 = vmul.f32 %v1366_v26, %v903_v30 }
 0x7e3   :  { %v920_v33 = vadd.f32 %v1367_v29, %v912_v31 }
 0x7e4   :  { %v919_v34 = vadd.f32 %v1367_v29, %v911_v32  ;;  %v1370_v29 = vld [vmem:[#allocation13 + $0x2] ss:$0 sm:$0xff] }
 0x7e5   :  { %v2743_v36 = vadd.f32 %v920_v33, %v2711_v38 }
 0x7e6   :  { %v2740_v35 = vadd.f32 %v919_v34, %v2708_v37  ;;  %v1229_v34 = vld [vmem:[#allocation20] sm:$0xff] }
 0x7e7   :  { %v1963_v42 = vpack.c.bf16 %v1230_v41, %v1229_v34  ;;  %v1374_v41 = vld [vmem:[#allocation22] ss:$0 sm:$0xff] }
 0x7e8   :  { %1690 = vmatprep.mubr.f32.mxu1 %v2740_v35 }
 0x7e9   :  { %1691 = vmatmul.mubr.f32.vlgmr.msra.gmra.mrb[4].mxu1 %v2743_v36  ;;  %1964 = vmatprep.subr.bf16.mxu1 %v1963_v42 }
 0x7ea   :  { %1966 = vmatpush3.bf16.msra.mxu1 %v1963_v42 }
 0x8bc   :  { %v1692_v45 = vpop.f32.mrb[4].mxu1 }
 0x8bd   :  { %v1020_v46 = vadd.f32 %v1692_v45, %v1368_v44  ;;  %v1014_v47 = vpop.f32.mrb[5].mxu1 }
 0x8be   :  { %v1015_v48 = vadd.f32 %v1368_v44, %v1014_v47 }
 0x8bf   :  { %v1026_v49 = vmul.f32 0.01, %v1020_v46  ;;  %vm1024_vm11 = vcmp.ge.f32.partialorder %v1020_v46, 0.0 }
 0x8c0   :  { %v1025_v37 = vmul.f32 0.01, %v1015_v48  ;;  %vm1023_vm12 = vcmp.ge.f32.partialorder %v1015_v48, 0.0 }
 0x8c1   :  { %v2747_v38 = vsel %vm1024_vm11, %v1020_v46, %v1026_v49 }
 0x8c2   :  { %1035 = vadd.xlane.f32.xlu1 %v2747_v38  ;;  %v2750_v39 = vsel %vm1023_vm12, %v1015_v48, %v1025_v37  ;;  %v1040_v40 = vmul.f32 %v2747_v38, %v2747_v38 }
 0x8c3   :  { %1033 = vadd.xlane.f32.xlu0 %v2750_v39  ;;  %v1039_v50 = vmul.f32 %v2750_v39, %v2750_v39 }
 0x8c6   :  { %1043 = vadd.xlane.f32.xlu1 %v1040_v40 }
 0x8c7   :  { %1041 = vadd.xlane.f32.xlu0 %v1039_v50  ;;  %v1231_v50 = vld [vmem:[#allocation20 + $0x10] sm:$0xff] }
 0x8c8   :  { %v1967_v52 = vpack.c.bf16 %v1232_v51, %v1231_v50 }
 0x8ca   :  { %1968 = vmatprep.subr.bf16.mxu1 %v1967_v52 }
 0x8cb   :  { %1970 = vmatpush3.bf16.msra.mxu1 %v1967_v52 }
 0x8cc   :  { %1972 = vmatprep.subr.bf16.mxu1 %v1971_v55 }
 0x8cf   :  { %1974 = vmatpush3.bf16.msra.mxu1 %v1971_v55 }
 0x8d0   :  { %1976 = vmatprep.subr.bf16.mxu1 %v1975_v58 }
 0x8d3   :  { %1978 = vmatpush3.bf16.msra.mxu1 %v1975_v58 }
 0x8d4   :  { %1980 = vmatprep.subr.bf16.mxu1 %v1979_v62 }
 0x8d7   :  { %1982 = vmatpush3.bf16.msra.mxu1 %v1979_v62 }
 0x8d8   :  { %1984 = vmatprep.subr.bf16.mxu1 %v1983_v0 }
 0x8db   :  { %1986 = vmatpush3.bf16.msra.mxu1 %v1983_v0 }
 0x8dc   :  { %1988 = vmatprep.subr.bf16.mxu1 %v1987_v3 }
 0x8df   :  { %1990 = vmatpush3.bf16.msra.mxu1 %v1987_v3 }
 0x8e0   :  { %1992 = vmatprep.subr.bf16.mxu1 %v1991_v6 }
 0x8e3   :  { %1994 = vmatpush3.bf16.msra.mxu1 %v1991_v6 }
 0x94f   :  { %v1036_v8 = vpop.xlane.xlu1 %1035 }
 0x950   :  { %v1038_v9 = vmul.f32 0.0078125, %v1036_v8  ;;  %v1034_v10 = vpop.xlane.xlu0 %1033 }
 0x951   :  { %v1037_v11 = vmul.f32 0.0078125, %v1034_v10 }
 0x952   :  { %v1048_v13 = vmul.f32 %v1038_v9, %v1038_v9  ;;  %v1052_v22 = vsub.f32 %v2747_v38, %v1038_v9 }
 0x953   :  { %v1044_v12 = vpop.xlane.xlu1 %1043  ;;  %v1047_v16 = vmul.f32 %v1037_v11, %v1037_v11  ;;  %v1051_v24 = vsub.f32 %v2750_v39, %v1037_v11 }
 0x954   :  { %v1046_v14 = vmul.f32 0.0078125, %v1044_v12  ;;  %v1042_v15 = vpop.xlane.xlu0 %1041 }
 0x955   :  { %v1045_v17 = vmul.f32 0.0078125, %v1042_v15 }
 0x956   :  { %v1050_v18 = vsub.f32 %v1046_v14, %v1048_v13 }
 0x957   :  { %v1049_v19 = vsub.f32 %v1045_v17, %v1047_v16 }
 0x958   :  { %v1054_v20 = vadd.f32 1e-05, %v1050_v18 }
 0x959   :  { %v1053_v21 = vadd.f32 1e-05, %v1049_v19 }
 0x95a   :  { %2029 = vrsqrt.f32 %v1054_v20 }
 0x95b   :  { %2031 = vrsqrt.f32 %v1053_v21 }
 0x964   :  { %v2030_v23 = vpop.eup %2029 }
 0x965   :  { %v2032_v26 = vpop.eup %2031  ;;  %v1058_v27 = vmul.f32 %v2030_v23, %v1052_v22 }
 0x966   :  { %v1057_v28 = vmul.f32 %v2032_v26, %v1051_v24  ;;  %v1372_v24 = vld [vmem:[#allocation17 + $0x2] ss:$0 sm:$0xff] }
 0x967   :  { %v1066_v30 = vmul.f32 %v1369_v25, %v1058_v27  ;;  %v1373_v27 = vld [vmem:[#allocation19 + $0x2] ss:$0 sm:$0xff] }
 0x968   :  { %v1065_v31 = vmul.f32 %v1369_v25, %v1057_v28 }
 0x969   :  { %v1074_v33 = vadd.f32 %v1370_v29, %v1066_v30 }
 0x96a   :  { %v1073_v32 = vadd.f32 %v1370_v29, %v1065_v31 }
 0x96c   :  { %1725 = vmatprep.mubr.f32.mxu0 %v1073_v32 }
 0x96d   :  { %1726 = vmatmul.mubr.f32.vlgmr.msra.gmra.mrb[6].mxu0 %v1074_v33 }
 0xa40   :  { %v1727_v44 = vpop.f32.mrb[6].mxu0 }
 0xa41   :  { %v1172_v45 = vadd.f32 %v1727_v44, %v1371_v43  ;;  %v1166_v46 = vpop.f32.mrb[7].mxu0 }
 0xa42   :  { %v1167_v47 = vadd.f32 %v1371_v43, %v1166_v46 }
 0xa43   :  { %v1178_v48 = vmul.f32 0.01, %v1172_v45  ;;  %vm1176_vm13 = vcmp.ge.f32.partialorder %v1172_v45, 0.0 }
 0xa44   :  { %v1177_v49 = vmul.f32 0.01, %v1167_v47  ;;  %vm1175_vm14 = vcmp.ge.f32.partialorder %v1167_v47, 0.0 }
 0xa45   :  { %v2759_v37 = vsel %vm1176_vm13, %v1172_v45, %v1178_v48 }
 0xa46   :  { %1187 = vadd.xlane.f32.xlu1 %v2759_v37  ;;  %v2762_v38 = vsel %vm1175_vm14, %v1167_v47, %v1177_v49  ;;  %v1192_v39 = vmul.f32 %v2759_v37, %v2759_v37 }
 0xa47   :  { %1185 = vadd.xlane.f32.xlu0 %v2762_v38  ;;  %v1191_v40 = vmul.f32 %v2762_v38, %v2762_v38 }
 0xa4a   :  { %1195 = vadd.xlane.f32.xlu1 %v1192_v39 }
 0xa4b   :  { %1193 = vadd.xlane.f32.xlu0 %v1191_v40 }
 0xad3   :  { %v1188_v7 = vpop.xlane.xlu1 %1187 }
 0xad4   :  { %v1190_v8 = vmul.f32 0.0078125, %v1188_v7  ;;  %v1186_v9 = vpop.xlane.xlu0 %1185 }
 0xad5   :  { %v1189_v10 = vmul.f32 0.0078125, %v1186_v9 }
 0xad6   :  { %v1200_v12 = vmul.f32 %v1190_v8, %v1190_v8  ;;  %v1204_v21 = vsub.f32 %v2759_v37, %v1190_v8 }
 0xad7   :  { %v1196_v11 = vpop.xlane.xlu1 %1195  ;;  %v1199_v15 = vmul.f32 %v1189_v10, %v1189_v10  ;;  %v1203_v23 = vsub.f32 %v2762_v38, %v1189_v10 }
 0xad8   :  { %v1198_v13 = vmul.f32 0.0078125, %v1196_v11  ;;  %v1194_v14 = vpop.xlane.xlu0 %1193 }
 0xad9   :  { %v1197_v16 = vmul.f32 0.0078125, %v1194_v14 }
 0xada   :  { %v1202_v17 = vsub.f32 %v1198_v13, %v1200_v12 }
 0xadb   :  { %v1201_v18 = vsub.f32 %v1197_v16, %v1199_v15 }
 0xadc   :  { %v1206_v19 = vadd.f32 1e-05, %v1202_v17 }
 0xadd   :  { %v1205_v20 = vadd.f32 1e-05, %v1201_v18 }
 0xade   :  { %2033 = vrsqrt.f32 %v1206_v19 }
 0xadf   :  { %2035 = vrsqrt.f32 %v1205_v20 }
 0xae8   :  { %v2034_v22 = vpop.eup %2033 }
 0xae9   :  { %v2036_v25 = vpop.eup %2035  ;;  %v1210_v26 = vmul.f32 %v2034_v22, %v1204_v21 }
 0xaea   :  { %v1209_v28 = vmul.f32 %v2036_v25, %v1203_v23 }
 0xaeb   :  { %v1218_v29 = vmul.f32 %v1372_v24, %v1210_v26 }
 0xaec   :  { %v1217_v30 = vmul.f32 %v1372_v24, %v1209_v28 }
 0xaed   :  { %v1226_v31 = vadd.f32 %v1373_v27, %v1218_v29 }
 0xaee   :  { %v1225_v32 = vadd.f32 %v1373_v27, %v1217_v30 }
 0xaef   :  { %v1228_v34 = vadd.f32 %v1226_v31, %v2743_v36 }
 0xaf0   :  { %v1227_v33 = vadd.f32 %v1225_v32, %v2740_v35 }
 0xaf2   :  { %1760 = vmatprep.mubr.f32.mxu1 %v1227_v33 }
 0xaf3   :  { %1761 = vmatmul.mubr.f32.vlgmr.msra.gmra.mrb[6].mxu1 %v1228_v34 }
 0xbc6   :  { %v1762_v42 = vpop.f32.mrb[6].mxu1 }
 0xbc7   :  { %v1324_v43 = vadd.f32 %v1762_v42, %v1374_v41  ;;  %v1318_v44 = vpop.f32.mrb[7].mxu1 }
 0xbc8   :  { %v1319_v45 = vadd.f32 %v1374_v41, %v1318_v44 }
 0xbc9   :  { %1329 = vst.msk [vmem:[#allocation23 + $0x8] sm:$0xff] %vm1327_vm15, %v1324_v43 }
 0xbca   :  { %1328 = vst.msk [vmem:[#allocation23] sm:$0xff] %vm1327_vm15, %v1319_v45 }
 0xbcb   :  { %2334 = shalt.err (!%p2331_p10)
}
 0xbcc   :  { %s2335_s0 = scalar_lea.hbm %s2801_s13, 256 }
 0xbcd   :  { %p2336_p11 = scmp.ne.s32.totalorder %s2801_s13, %s2335_s0  ;;  %p2339_p12 = scmp.lt.u32.totalorder %s2335_s0, %s2801_s13 }
 0xbcf   :  { %p2341_p13 = pnand %p2339_p12, %p2336_p11 }
 0xbd1   :  { %2344 = shalt.err (!%p2341_p13)
}
 0xbd2   :  { %1341 = dma.vmem_to_hbm [thread:$0]  %s1336_s17, 256, %s2801_s13, [#allocation4], %s2363_s20, %s2363_s20, %s2364_s21  }
 0xbd3   :  { %2359 = dma.done.wait [#allocation4], 256  }
 0xbd4   :  { %2360 = vsyncadd [#allocation4], 4294967040 }
 0xbd5   :  { %1345 = vsyncpa [#allocation3], 1 }
 0xbd6   :  { %1346 = vsyncpa [#allocation6], 1 }
 0xbd7   :  { %1347 = vsyncpa [#allocation9], 1 }
 0xbd8   :  { %1348 = vsyncpa [#allocation12], 1 }
 0xbd9   :  { %1349 = vsyncpa [#allocation15], 1 }
 0xbda   :  { %1350 = vsyncpa [#allocation18], 1 }
 0xbdb   :  { %1351 = vsyncpa [#allocation21], 1 }
 0xbdc   :  { %1352 = vsyncpa [#allocation4], 1 }

</bundles_post_ra>
